<compile_context>
chip_gen: v7x
topology: tpu7x:2x2x1
jax: 0.10.0
libtpu: 0.0.40
codegen_flags: <defaults>
</compile_context>

<pallas_src>
import functools

import jax
import jax.numpy as jnp
from jax.experimental import pallas as pl
from jax.experimental.pallas import tpu as pltpu

EPS = 1e-5
# Scoped-VMEM request: <= 48 MiB keeps headroom on v7x (64 MiB / TensorCore)
# while letting v5e/v6e (128 MiB physical) run large streaming tiles.
VMEM_LIMIT = 48 * 1024 * 1024


def _round_up(a, b):
    return (a + b - 1) // b * b


def _pick_tm(m):
    """Matmul row tile: largest power of two that still yields >=2 grid steps
    (keeps both v7x TensorCores busy) while bounding the full-K x tile."""
    for tm in (512, 256, 128, 64, 32, 16, 8):
        if m >= 2 * tm:
            return tm
    return 8


def _pick_tm_ew(m_pad, tm, n_pad):
    """Row tile for the streaming (elementwise) kernels: grow it while it
    divides m_pad, keeps >=2 grid steps and stays within a few MiB / slab."""
    max_rows = max(tm, min(4096, (4 * 1024 * 1024) // (n_pad * 4)))
    tm_ew = tm
    while (tm_ew * 2 <= max_rows and m_pad % (tm_ew * 2) == 0
           and m_pad // (tm_ew * 2) >= 2):
        tm_ew *= 2
    return tm_ew


def _col_map(col):
    """index_map picking row-block i and a fixed column block of a wide slab."""
    def index_map(i):
        return (i, col)
    return index_map


# ---------------- Pallas kernels ----------------

def _conv_stats_kernel(x_ref, w_ref, y_ref, sum_ref, ssq_ref):
    """Full-K im2col matmul (bf16 MXU, f32 out) + per-tile column stats.
    Padded rows/columns are exact zeros (no conv bias), so no masking here."""
    y = jnp.dot(x_ref[...], w_ref[...], preferred_element_type=jnp.float32)
    y_ref[...] = y
    tm, n = y.shape
    yg = y.reshape(tm // 8, 8, n)                 # sublane-group partials
    sum_ref[...] = jnp.sum(yg, axis=0)[None]      # (1, 8, n)
    ssq_ref[...] = jnp.sum(yg * yg, axis=0)[None]


def _bn_act_kernel(y_ref, s_ref, c_ref, o_ref, *, relu):
    """o = y * scale + bias (optionally ReLU); o_ref.dtype sets output dtype."""
    o = y_ref[...] * s_ref[...] + c_ref[...]
    if relu:
        o = jnp.maximum(o, 0.0)
    o_ref[...] = o.astype(o_ref.dtype)


def _bn_relu_add_stats_kernel(y_ref, r_ref, s2_ref, c2_ref, sr_ref, cr_ref,
                              z_ref, sum_ref, ssq_ref, *, tm, m_real):
    """z = relu(y*s2 + c2) + (r*sr + cr), plus per-tile stats of z with padded
    rows masked.  program_id is used only at kernel top level."""
    row0 = pl.program_id(0) * tm
    h = jnp.maximum(y_ref[...] * s2_ref[...] + c2_ref[...], 0.0)
    resid = r_ref[...] * sr_ref[...] + cr_ref[...]
    z = h + resid
    z_ref[...] = z
    row = row0 + jax.lax.broadcasted_iota(jnp.int32, z.shape, 0)
    zm = jnp.where(row < m_real, z, 0.0)
    n = z.shape[1]
    zg = zm.reshape(tm // 8, 8, n)
    sum_ref[...] = jnp.sum(zg, axis=0)[None]
    ssq_ref[...] = jnp.sum(zg * zg, axis=0)[None]


# ---------------- Pallas launchers ----------------

def conv_matmul_stats(patches, w, m_pad, tm):
    """patches [M, K] bf16, w [K, n_cat] bf16 (n_cat % 128 == 0) ->
    y [m_pad, n_cat] f32 and per-channel column sum / sum-of-squares."""
    M, K = patches.shape
    n_cat = w.shape[1]
    grid_m = m_pad // tm
    x = jnp.pad(patches, ((0, m_pad - M), (0, 0))) if m_pad > M else patches

    y, psum, pssq = pl.pallas_call(
        _conv_stats_kernel,
        out_shape=(
            jax.ShapeDtypeStruct((m_pad, n_cat), jnp.float32),
            jax.ShapeDtypeStruct((grid_m, 8, n_cat), jnp.float32),
            jax.ShapeDtypeStruct((grid_m, 8, n_cat), jnp.float32),
        ),
        grid=(grid_m,),
        in_specs=[
            pl.BlockSpec((tm, K), lambda i: (i, 0)),
            pl.BlockSpec((K, n_cat), lambda i: (0, 0)),   # VMEM-resident weight
        ],
        out_specs=(
            pl.BlockSpec((tm, n_cat), lambda i: (i, 0)),
            pl.BlockSpec((1, 8, n_cat), lambda i: (i, 0, 0)),
            pl.BlockSpec((1, 8, n_cat), lambda i: (i, 0, 0)),
        ),
        compiler_params=pltpu.CompilerParams(
            dimension_semantics=("parallel",),
            vmem_limit_bytes=VMEM_LIMIT,
        ),
    )(x, w)
    return y, jnp.sum(psum, axis=(0, 1)), jnp.sum(pssq, axis=(0, 1))


def bn_apply(y, col_block, scale, bias, relu, n_pad, tm, out_dtype):
    """BN apply (+ optional ReLU) on one n_pad-wide column block of y."""
    m_pad = y.shape[0]
    grid_m = m_pad // tm
    kernel = functools.partial(_bn_act_kernel, relu=relu)
    return pl.pallas_call(
        kernel,
        out_shape=jax.ShapeDtypeStruct((m_pad, n_pad), out_dtype),
        grid=(grid_m,),
        in_specs=[
            pl.BlockSpec((tm, n_pad), _col_map(col_block)),
            pl.BlockSpec((1, n_pad), lambda i: (0, 0)),
            pl.BlockSpec((1, n_pad), lambda i: (0, 0)),
        ],
        out_specs=pl.BlockSpec((tm, n_pad), lambda i: (i, 0)),
        compiler_params=pltpu.CompilerParams(
            dimension_semantics=("parallel",),
            vmem_limit_bytes=VMEM_LIMIT,
        ),
    )(y, scale, bias)


def bn_relu_add_stats(y2, res, res_col, scale2, bias2, scale_r, bias_r,
                      m_real, n_pad, tm):
    """z = relu(BN2(y2)) + BN_r(res[:, res_col block]); stats of z fused in."""
    m_pad = y2.shape[0]
    grid_m = m_pad // tm
    kernel = functools.partial(_bn_relu_add_stats_kernel, tm=tm, m_real=m_real)
    z, psum, pssq = pl.pallas_call(
        kernel,
        out_shape=(
            jax.ShapeDtypeStruct((m_pad, n_pad), jnp.float32),
            jax.ShapeDtypeStruct((grid_m, 8, n_pad), jnp.float32),
            jax.ShapeDtypeStruct((grid_m, 8, n_pad), jnp.float32),
        ),
        grid=(grid_m,),
        in_specs=[
            pl.BlockSpec((tm, n_pad), lambda i: (i, 0)),
            pl.BlockSpec((tm, n_pad), _col_map(res_col)),
            pl.BlockSpec((1, n_pad), lambda i: (0, 0)),
            pl.BlockSpec((1, n_pad), lambda i: (0, 0)),
            pl.BlockSpec((1, n_pad), lambda i: (0, 0)),
            pl.BlockSpec((1, n_pad), lambda i: (0, 0)),
        ],
        out_specs=(
            pl.BlockSpec((tm, n_pad), lambda i: (i, 0)),
            pl.BlockSpec((1, 8, n_pad), lambda i: (i, 0, 0)),
            pl.BlockSpec((1, 8, n_pad), lambda i: (i, 0, 0)),
        ),
        compiler_params=pltpu.CompilerParams(
            dimension_semantics=("parallel",),
            vmem_limit_bytes=VMEM_LIMIT,
        ),
    )(y2, res, scale2, bias2, scale_r, bias_r)
    return z, jnp.sum(psum, axis=(0, 1)), jnp.sum(pssq, axis=(0, 1))


# ---------------- JAX glue ----------------

def im2col(x_nhwc, stride):
    """3x3, pad=1 conv patches (built in the input dtype, e.g. bf16).
    Returns ([N*Ho*Wo, 9*C], Ho, Wo)."""
    # TODO(synk): replace materialized im2col with a direct Pallas conv that
    # walks the 9 taps via a grid axis indexing the padded NHWC slab, removing
    # the 9x patch round-trip through HBM.
    N, H, W, C = x_nhwc.shape
    xp = jnp.pad(x_nhwc, ((0, 0), (1, 1), (1, 1), (0, 0)))
    Ho = (H + 2 - 3) // stride + 1
    Wo = (W + 2 - 3) // stride + 1
    cols = []
    for dh in range(3):
        for dw in range(3):
            cols.append(
                xp[:, dh:dh + (Ho - 1) * stride + 1:stride,
                      dw:dw + (Wo - 1) * stride + 1:stride, :]
            )
    patches = jnp.concatenate(cols, axis=-1)  # [N, Ho, Wo, 9*C]
    return patches.reshape(N * Ho * Wo, 9 * C), Ho, Wo


def _bn_coeffs(col_sum, col_ssq, count, gamma, beta, n_pad):
    """Per-channel BN scale/bias from in-kernel accumulated sums (f32 math).
    Note: the conv bias cancels exactly under training-mode BN (it shifts the
    batch mean by the same constant), so it is intentionally omitted."""
    mean = col_sum / count
    var = jnp.maximum(col_ssq / count - mean * mean, 0.0)  # biased variance
    g = jnp.pad(gamma, (0, n_pad - gamma.shape[0]), constant_values=1.0)
    bt = jnp.pad(beta, (0, n_pad - beta.shape[0]))
    scale = g / jnp.sqrt(var + EPS)
    bias = bt - mean * scale
    return (scale.reshape(1, n_pad).astype(jnp.float32),
            bias.reshape(1, n_pad).astype(jnp.float32))


def init_params(key, in_channel, out_channel, downsample):
    ks = jax.random.split(key, 6)

    def conv_w(k, cin, cout):
        # PyTorch weight layout [Cout, Cin, 3, 3] -> im2col layout [9*Cin, Cout]
        w = jax.random.normal(k, (cout, cin, 3, 3), jnp.float32) * 0.1
        return jnp.transpose(w, (2, 3, 1, 0)).reshape(9 * cin, cout)

    # Conv biases are kept for parity with nn.Conv2d(bias=True) but have zero
    # effect on the forward output: training-mode BatchNorm subtracts them.
    p = {
        "w1": conv_w(ks[0], in_channel, out_channel),
        "b1": jax.random.normal(ks[1], (out_channel,), jnp.float32) * 0.01,
        "w2": conv_w(ks[2], out_channel, out_channel),
        "b2": jax.random.normal(ks[3], (out_channel,), jnp.float32) * 0.01,
        "gamma1": jnp.ones((out_channel,), jnp.float32),
        "beta1": jnp.zeros((out_channel,), jnp.float32),
        "gamma2": jnp.ones((out_channel,), jnp.float32),
        "beta2": jnp.zeros((out_channel,), jnp.float32),
        "gamma3": jnp.ones((out_channel,), jnp.float32),
        "beta3": jnp.zeros((out_channel,), jnp.float32),
    }
    if downsample:
        p["wr"] = conv_w(ks[4], in_channel, out_channel)
        p["br"] = jax.random.normal(ks[5], (out_channel,), jnp.float32) * 0.01
        p["gamma_r"] = jnp.ones((out_channel,), jnp.float32)
        p["beta_r"] = jnp.zeros((out_channel,), jnp.float32)
    return p


def basic_block_forward(x_nchw, params, downsample):
    x = jnp.transpose(x_nchw, (0, 2, 3, 1)).astype(jnp.float32)  # NHWC
    N, H, W, Cin = x.shape
    stride = 2 if downsample else 1
    Cout = params["w1"].shape[-1]
    n_pad = _round_up(Cout, 128)                 # lane-dense channel slab

    x_bf = x.astype(jnp.bfloat16)                # bf16 before im2col (1x slab)
    patches1, Ho, Wo = im2col(x_bf, stride)      # [M, 9*Cin] bf16
    M = N * Ho * Wo
    tm = _pick_tm(M)
    m_pad = _round_up(M, tm)
    tm_ew = _pick_tm_ew(m_pad, tm, n_pad)
    cnt = float(M)

    # Fuse conv1 and the downsample residual conv into one wide matmul so
    # patches1 is streamed from HBM once and the MXU sees >=256 output lanes.
    w1p = jnp.pad(params["w1"], ((0, 0), (0, n_pad - Cout)))
    if downsample:
        wrp = jnp.pad(params["wr"], ((0, 0), (0, n_pad - Cout)))
        w_cat = jnp.concatenate([w1p, wrp], axis=1).astype(jnp.bfloat16)
    else:
        w_cat = w1p.astype(jnp.bfloat16)

    y_cat, s_cat, q_cat = conv_matmul_stats(patches1, w_cat, m_pad, tm)

    # x = relu(norm1(conv1(x))) ; a1 stored in bf16 (feeds conv2's patches)
    scale1, bias1 = _bn_coeffs(s_cat[:n_pad], q_cat[:n_pad], cnt,
                               params["gamma1"], params["beta1"], n_pad)
    a1 = bn_apply(y_cat, 0, scale1, bias1, relu=True,
                  n_pad=n_pad, tm=tm_ew, out_dtype=jnp.bfloat16)

    # conv2 on relu(norm1(...))
    a1_nhwc = a1[:M, :Cout].reshape(N, Ho, Wo, Cout)
    patches2, _, _ = im2col(a1_nhwc, 1)
    w2p = jnp.pad(params["w2"], ((0, 0), (0, n_pad - Cout))).astype(jnp.bfloat16)
    y2, s2v, q2v = conv_matmul_stats(patches2, w2p, m_pad, tm)
    scale2, bias2 = _bn_coeffs(s2v, q2v, cnt,
                               params["gamma2"], params["beta2"], n_pad)

    # residual = self.res(x): BN of the residual conv is fused into the add
    # kernel (it reads the second column block of y_cat directly).
    if downsample:
        scale_r, bias_r = _bn_coeffs(s_cat[n_pad:], q_cat[n_pad:], cnt,
                                     params["gamma_r"], params["beta_r"], n_pad)
        res_arr, res_col = y_cat, 1
    else:
        # Identity residual (PyTorch requires Cin == Cout in this case).
        r = x.reshape(M, Cin)
        res_arr = jnp.pad(r, ((0, m_pad - M), (0, n_pad - Cin)))
        res_col = 0
        scale_r = jnp.ones((1, n_pad), jnp.float32)
        bias_r = jnp.zeros((1, n_pad), jnp.float32)

    # z = relu(norm2(conv2)) + residual, with stats of z emitted by the kernel
    z, s3v, q3v = bn_relu_add_stats(y2, res_arr, res_col, scale2, bias2,
                                    scale_r, bias_r, M, n_pad, tm_ew)
    scale3, bias3 = _bn_coeffs(s3v, q3v, cnt,
                               params["gamma3"], params["beta3"], n_pad)

    # out = relu(norm3(z))
    out = bn_apply(z, 0, scale3, bias3, relu=True,
                   n_pad=n_pad, tm=tm_ew, out_dtype=jnp.float32)

    out = out[:M, :Cout].reshape(N, Ho, Wo, Cout)
    return jnp.transpose(out, (0, 3, 1, 2))      # NCHW


if __name__ == "__main__":
    key = jax.random.PRNGKey(0)
    kx, kp = jax.random.split(key)

    downsample = True
    out_channel = 8
    in_channel = out_channel if out_channel == 64 else out_channel // 2

    x = jax.random.normal(kx, (2, in_channel, 16, 16), jnp.float32)
    params = init_params(kp, in_channel, out_channel, downsample)

    forward = jax.jit(basic_block_forward, static_argnames=("downsample",))
    out = forward(x, params, downsample=downsample)
    jax.block_until_ready(out)
    assert out.shape == (2, out_channel, 8, 8)
    assert bool(jnp.all(jnp.isfinite(out)))
    print("KERNEL_OK")
</pallas_src>

<mosaic_0001>
module attributes {stable_mosaic.version = 11 : i64} {
  func.func @_conv_stats_kernel(%arg0: i32, %arg1: memref<64x36xbf16, #tpu.memory_space<vmem>>, %arg2: memref<36x256xbf16, #tpu.memory_space<vmem>>, %arg3: memref<64x256xf32, #tpu.memory_space<vmem>>, %arg4: memref<1x8x256xf32, #tpu.memory_space<vmem>>, %arg5: memref<1x8x256xf32, #tpu.memory_space<vmem>>) attributes {dimension_semantics = [#tpu.dimension_semantics<parallel>], iteration_bounds = array<i64: 2>, scalar_prefetch = 0 : i64, scratch_operands = 0 : i64, tpu.core_type = #tpu.core_type<tc>, window_params = [{transform_indices = @transform_0, window_bounds = array<i64: 64, 36>}, {pipeline_mode = #tpu.pipeline_mode<synchronous>, transform_indices = @transform_1, window_bounds = array<i64: 36, 256>}, {transform_indices = @transform_2, window_bounds = array<i64: 64, 256>}, {transform_indices = @transform_3, window_bounds = array<i64: 1, 8, 256>}, {transform_indices = @transform_4, window_bounds = array<i64: 1, 8, 256>}]} {
    %c0 = arith.constant 0 : index
    %c0_0 = arith.constant 0 : index
    %0 = vector.load %arg1[%c0, %c0_0] : memref<64x36xbf16, #tpu.memory_space<vmem>>, vector<64x36xbf16>
    %c0_1 = arith.constant 0 : index
    %c0_2 = arith.constant 0 : index
    %1 = vector.load %arg2[%c0_1, %c0_2] : memref<36x256xbf16, #tpu.memory_space<vmem>>, vector<36x256xbf16>
    %cst = arith.constant dense<0.000000e+00> : vector<64x256xf32>
    %2 = tpu.matmul %0, %1, %cst {dimension_numbers = #tpu.dot_dimension_numbers<[1], [0], [0], [1], [0, 0, 1, 1], [], []>} : vector<64x36xbf16>, vector<36x256xbf16>, vector<64x256xf32> -> vector<64x256xf32>
    %c0_3 = arith.constant 0 : index
    %c0_4 = arith.constant 0 : index
    %3 = vector.load %arg3[%c0_3, %c0_4] : memref<64x256xf32, #tpu.memory_space<vmem>>, vector<64x256xf32>
    tpu.vector_store %arg3[%c0_3, %c0_4], %2 {strides = array<i32>} : memref<64x256xf32, #tpu.memory_space<vmem>>, vector<64x256xf32>,
    %4 = vector.shape_cast %2 : vector<64x256xf32> to vector<8x8x256xf32>
    %cst_5 = arith.constant dense<0.000000e+00> : vector<8x256xf32>
    %5 = vector.multi_reduction <add>, %4, %cst_5 [0] : vector<8x8x256xf32> to vector<8x256xf32>
    %6 = vector.shape_cast %5 : vector<8x256xf32> to vector<1x8x256xf32>
    %c0_6 = arith.constant 0 : index
    %c0_7 = arith.constant 0 : index
    %c0_8 = arith.constant 0 : index
    %7 = vector.load %arg4[%c0_6, %c0_7, %c0_8] : memref<1x8x256xf32, #tpu.memory_space<vmem>>, vector<1x8x256xf32>
    tpu.vector_store %arg4[%c0_6, %c0_7, %c0_8], %6 {strides = array<i32>} : memref<1x8x256xf32, #tpu.memory_space<vmem>>, vector<1x8x256xf32>,
    %8 = arith.mulf %4, %4 : vector<8x8x256xf32>
    %cst_9 = arith.constant dense<0.000000e+00> : vector<8x256xf32>
    %9 = vector.multi_reduction <add>, %8, %cst_9 [0] : vector<8x8x256xf32> to vector<8x256xf32>
    %10 = vector.shape_cast %9 : vector<8x256xf32> to vector<1x8x256xf32>
    %c0_10 = arith.constant 0 : index
    %c0_11 = arith.constant 0 : index
    %c0_12 = arith.constant 0 : index
    %11 = vector.load %arg5[%c0_10, %c0_11, %c0_12] : memref<1x8x256xf32, #tpu.memory_space<vmem>>, vector<1x8x256xf32>
    tpu.vector_store %arg5[%c0_10, %c0_11, %c0_12], %10 {strides = array<i32>} : memref<1x8x256xf32, #tpu.memory_space<vmem>>, vector<1x8x256xf32>,
    return
  }
  func.func @transform_0(%arg0: i32) -> (i32, i32) {
    %c0_i32 = arith.constant 0 : i32
    %c0_i32_0 = arith.constant 0 : i32
    return %arg0, %c0_i32 : i32, i32
  }
  func.func @transform_1(%arg0: i32) -> (i32, i32) {
    %c0_i32 = arith.constant 0 : i32
    %c0_i32_0 = arith.constant 0 : i32
    %c0_i32_1 = arith.constant 0 : i32
    return %c0_i32, %c0_i32_0 : i32, i32
  }
  func.func @transform_2(%arg0: i32) -> (i32, i32) {
    %c0_i32 = arith.constant 0 : i32
    %c0_i32_0 = arith.constant 0 : i32
    return %arg0, %c0_i32 : i32, i32
  }
  func.func @transform_3(%arg0: i32) -> (i32, i32, i32) {
    %c0_i32 = arith.constant 0 : i32
    %c0_i32_0 = arith.constant 0 : i32
    %c0_i32_1 = arith.constant 0 : i32
    return %arg0, %c0_i32, %c0_i32_0 : i32, i32, i32
  }
  func.func @transform_4(%arg0: i32) -> (i32, i32, i32) {
    %c0_i32 = arith.constant 0 : i32
    %c0_i32_0 = arith.constant 0 : i32
    %c0_i32_1 = arith.constant 0 : i32
    return %arg0, %c0_i32, %c0_i32_0 : i32, i32, i32
  }
}

module attributes {stable_mosaic.version = 11 : i64} {
  func.func @_bn_act_kernel(%arg0: i32, %arg1: memref<64x128xf32, #tpu.memory_space<vmem>>, %arg2: memref<1x128xf32, #tpu.memory_space<vmem>>, %arg3: memref<1x128xf32, #tpu.memory_space<vmem>>, %arg4: memref<64x128xbf16, #tpu.memory_space<vmem>>) attributes {dimension_semantics = [#tpu.dimension_semantics<parallel>], iteration_bounds = array<i64: 2>, scalar_prefetch = 0 : i64, scratch_operands = 0 : i64, tpu.core_type = #tpu.core_type<tc>, window_params = [{transform_indices = @transform_0, window_bounds = array<i64: 64, 128>}, {pipeline_mode = #tpu.pipeline_mode<synchronous>, transform_indices = @transform_1, window_bounds = array<i64: 1, 128>}, {pipeline_mode = #tpu.pipeline_mode<synchronous>, transform_indices = @transform_2, window_bounds = array<i64: 1, 128>}, {transform_indices = @transform_3, window_bounds = array<i64: 64, 128>}]} {
    %c0 = arith.constant 0 : index
    %c0_0 = arith.constant 0 : index
    %0 = vector.load %arg1[%c0, %c0_0] : memref<64x128xf32, #tpu.memory_space<vmem>>, vector<64x128xf32>
    %c0_1 = arith.constant 0 : index
    %c0_2 = arith.constant 0 : index
    %1 = vector.load %arg2[%c0_1, %c0_2] : memref<1x128xf32, #tpu.memory_space<vmem>>, vector<1x128xf32>
    %2 = vector.broadcast %1 : vector<1x128xf32> to vector<64x128xf32>
    %3 = arith.mulf %0, %2 : vector<64x128xf32>
    %c0_3 = arith.constant 0 : index
    %c0_4 = arith.constant 0 : index
    %4 = vector.load %arg3[%c0_3, %c0_4] : memref<1x128xf32, #tpu.memory_space<vmem>>, vector<1x128xf32>
    %5 = vector.broadcast %4 : vector<1x128xf32> to vector<64x128xf32>
    %6 = arith.addf %3, %5 : vector<64x128xf32>
    %cst = arith.constant 0.000000e+00 : f32
    %7 = vector.broadcast %cst : f32 to vector<64x128xf32>
    %8 = arith.maximumf %6, %7 : vector<64x128xf32>
    %9 = arith.truncf %8 : vector<64x128xf32> to vector<64x128xbf16>
    %c0_5 = arith.constant 0 : index
    %c0_6 = arith.constant 0 : index
    %10 = vector.load %arg4[%c0_5, %c0_6] : memref<64x128xbf16, #tpu.memory_space<vmem>>, vector<64x128xbf16>
    tpu.vector_store %arg4[%c0_5, %c0_6], %9 {strides = array<i32>} : memref<64x128xbf16, #tpu.memory_space<vmem>>, vector<64x128xbf16>,
    return
  }
  func.func @transform_0(%arg0: i32) -> (i32, i32) {
    %c0_i32 = arith.constant 0 : i32
    %c0_i32_0 = arith.constant 0 : i32
    return %arg0, %c0_i32 : i32, i32
  }
  func.func @transform_1(%arg0: i32) -> (i32, i32) {
    %c0_i32 = arith.constant 0 : i32
    %c0_i32_0 = arith.constant 0 : i32
    %c0_i32_1 = arith.constant 0 : i32
    return %c0_i32, %c0_i32_0 : i32, i32
  }
  func.func @transform_2(%arg0: i32) -> (i32, i32) {
    %c0_i32 = arith.constant 0 : i32
    %c0_i32_0 = arith.constant 0 : i32
    %c0_i32_1 = arith.constant 0 : i32
    return %c0_i32, %c0_i32_0 : i32, i32
  }
  func.func @transform_3(%arg0: i32) -> (i32, i32) {
    %c0_i32 = arith.constant 0 : i32
    %c0_i32_0 = arith.constant 0 : i32
    return %arg0, %c0_i32 : i32, i32
  }
}

module attributes {stable_mosaic.version = 11 : i64} {
  func.func @_conv_stats_kernel(%arg0: i32, %arg1: memref<64x72xbf16, #tpu.memory_space<vmem>>, %arg2: memref<72x128xbf16, #tpu.memory_space<vmem>>, %arg3: memref<64x128xf32, #tpu.memory_space<vmem>>, %arg4: memref<1x8x128xf32, #tpu.memory_space<vmem>>, %arg5: memref<1x8x128xf32, #tpu.memory_space<vmem>>) attributes {dimension_semantics = [#tpu.dimension_semantics<parallel>], iteration_bounds = array<i64: 2>, scalar_prefetch = 0 : i64, scratch_operands = 0 : i64, tpu.core_type = #tpu.core_type<tc>, window_params = [{transform_indices = @transform_0, window_bounds = array<i64: 64, 72>}, {pipeline_mode = #tpu.pipeline_mode<synchronous>, transform_indices = @transform_1, window_bounds = array<i64: 72, 128>}, {transform_indices = @transform_2, window_bounds = array<i64: 64, 128>}, {transform_indices = @transform_3, window_bounds = array<i64: 1, 8, 128>}, {transform_indices = @transform_4, window_bounds = array<i64: 1, 8, 128>}]} {
    %c0 = arith.constant 0 : index
    %c0_0 = arith.constant 0 : index
    %0 = vector.load %arg1[%c0, %c0_0] : memref<64x72xbf16, #tpu.memory_space<vmem>>, vector<64x72xbf16>
    %c0_1 = arith.constant 0 : index
    %c0_2 = arith.constant 0 : index
    %1 = vector.load %arg2[%c0_1, %c0_2] : memref<72x128xbf16, #tpu.memory_space<vmem>>, vector<72x128xbf16>
    %cst = arith.constant dense<0.000000e+00> : vector<64x128xf32>
    %2 = tpu.matmul %0, %1, %cst {dimension_numbers = #tpu.dot_dimension_numbers<[1], [0], [0], [1], [0, 0, 1, 1], [], []>} : vector<64x72xbf16>, vector<72x128xbf16>, vector<64x128xf32> -> vector<64x128xf32>
    %c0_3 = arith.constant 0 : index
    %c0_4 = arith.constant 0 : index
    %3 = vector.load %arg3[%c0_3, %c0_4] : memref<64x128xf32, #tpu.memory_space<vmem>>, vector<64x128xf32>
    tpu.vector_store %arg3[%c0_3, %c0_4], %2 {strides = array<i32>} : memref<64x128xf32, #tpu.memory_space<vmem>>, vector<64x128xf32>,
    %4 = vector.shape_cast %2 : vector<64x128xf32> to vector<8x8x128xf32>
    %cst_5 = arith.constant dense<0.000000e+00> : vector<8x128xf32>
    %5 = vector.multi_reduction <add>, %4, %cst_5 [0] : vector<8x8x128xf32> to vector<8x128xf32>
    %6 = vector.shape_cast %5 : vector<8x128xf32> to vector<1x8x128xf32>
    %c0_6 = arith.constant 0 : index
    %c0_7 = arith.constant 0 : index
    %c0_8 = arith.constant 0 : index
    %7 = vector.load %arg4[%c0_6, %c0_7, %c0_8] : memref<1x8x128xf32, #tpu.memory_space<vmem>>, vector<1x8x128xf32>
    tpu.vector_store %arg4[%c0_6, %c0_7, %c0_8], %6 {strides = array<i32>} : memref<1x8x128xf32, #tpu.memory_space<vmem>>, vector<1x8x128xf32>,
    %8 = arith.mulf %4, %4 : vector<8x8x128xf32>
    %cst_9 = arith.constant dense<0.000000e+00> : vector<8x128xf32>
    %9 = vector.multi_reduction <add>, %8, %cst_9 [0] : vector<8x8x128xf32> to vector<8x128xf32>
    %10 = vector.shape_cast %9 : vector<8x128xf32> to vector<1x8x128xf32>
    %c0_10 = arith.constant 0 : index
    %c0_11 = arith.constant 0 : index
    %c0_12 = arith.constant 0 : index
    %11 = vector.load %arg5[%c0_10, %c0_11, %c0_12] : memref<1x8x128xf32, #tpu.memory_space<vmem>>, vector<1x8x128xf32>
    tpu.vector_store %arg5[%c0_10, %c0_11, %c0_12], %10 {strides = array<i32>} : memref<1x8x128xf32, #tpu.memory_space<vmem>>, vector<1x8x128xf32>,
    return
  }
  func.func @transform_0(%arg0: i32) -> (i32, i32) {
    %c0_i32 = arith.constant 0 : i32
    %c0_i32_0 = arith.constant 0 : i32
    return %arg0, %c0_i32 : i32, i32
  }
  func.func @transform_1(%arg0: i32) -> (i32, i32) {
    %c0_i32 = arith.constant 0 : i32
    %c0_i32_0 = arith.constant 0 : i32
    %c0_i32_1 = arith.constant 0 : i32
    return %c0_i32, %c0_i32_0 : i32, i32
  }
  func.func @transform_2(%arg0: i32) -> (i32, i32) {
    %c0_i32 = arith.constant 0 : i32
    %c0_i32_0 = arith.constant 0 : i32
    return %arg0, %c0_i32 : i32, i32
  }
  func.func @transform_3(%arg0: i32) -> (i32, i32, i32) {
    %c0_i32 = arith.constant 0 : i32
    %c0_i32_0 = arith.constant 0 : i32
    %c0_i32_1 = arith.constant 0 : i32
    return %arg0, %c0_i32, %c0_i32_0 : i32, i32, i32
  }
  func.func @transform_4(%arg0: i32) -> (i32, i32, i32) {
    %c0_i32 = arith.constant 0 : i32
    %c0_i32_0 = arith.constant 0 : i32
    %c0_i32_1 = arith.constant 0 : i32
    return %arg0, %c0_i32, %c0_i32_0 : i32, i32, i32
  }
}

module attributes {stable_mosaic.version = 11 : i64} {
  func.func @_bn_act_kernel(%arg0: i32, %arg1: memref<64x128xf32, #tpu.memory_space<vmem>>, %arg2: memref<1x128xf32, #tpu.memory_space<vmem>>, %arg3: memref<1x128xf32, #tpu.memory_space<vmem>>, %arg4: memref<64x128xf32, #tpu.memory_space<vmem>>) attributes {dimension_semantics = [#tpu.dimension_semantics<parallel>], iteration_bounds = array<i64: 2>, scalar_prefetch = 0 : i64, scratch_operands = 0 : i64, tpu.core_type = #tpu.core_type<tc>, window_params = [{transform_indices = @transform_0, window_bounds = array<i64: 64, 128>}, {pipeline_mode = #tpu.pipeline_mode<synchronous>, transform_indices = @transform_1, window_bounds = array<i64: 1, 128>}, {pipeline_mode = #tpu.pipeline_mode<synchronous>, transform_indices = @transform_2, window_bounds = array<i64: 1, 128>}, {transform_indices = @transform_3, window_bounds = array<i64: 64, 128>}]} {
    %c0 = arith.constant 0 : index
    %c0_0 = arith.constant 0 : index
    %0 = vector.load %arg1[%c0, %c0_0] : memref<64x128xf32, #tpu.memory_space<vmem>>, vector<64x128xf32>
    %c0_1 = arith.constant 0 : index
    %c0_2 = arith.constant 0 : index
    %1 = vector.load %arg2[%c0_1, %c0_2] : memref<1x128xf32, #tpu.memory_space<vmem>>, vector<1x128xf32>
    %2 = vector.broadcast %1 : vector<1x128xf32> to vector<64x128xf32>
    %3 = arith.mulf %0, %2 : vector<64x128xf32>
    %c0_3 = arith.constant 0 : index
    %c0_4 = arith.constant 0 : index
    %4 = vector.load %arg3[%c0_3, %c0_4] : memref<1x128xf32, #tpu.memory_space<vmem>>, vector<1x128xf32>
    %5 = vector.broadcast %4 : vector<1x128xf32> to vector<64x128xf32>
    %6 = arith.addf %3, %5 : vector<64x128xf32>
    %cst = arith.constant 0.000000e+00 : f32
    %7 = vector.broadcast %cst : f32 to vector<64x128xf32>
    %8 = arith.maximumf %6, %7 : vector<64x128xf32>
    %c0_5 = arith.constant 0 : index
    %c0_6 = arith.constant 0 : index
    %9 = vector.load %arg4[%c0_5, %c0_6] : memref<64x128xf32, #tpu.memory_space<vmem>>, vector<64x128xf32>
    tpu.vector_store %arg4[%c0_5, %c0_6], %8 {strides = array<i32>} : memref<64x128xf32, #tpu.memory_space<vmem>>, vector<64x128xf32>,
    return
  }
  func.func @transform_0(%arg0: i32) -> (i32, i32) {
    %c0_i32 = arith.constant 0 : i32
    %c0_i32_0 = arith.constant 0 : i32
    return %arg0, %c0_i32 : i32, i32
  }
  func.func @transform_1(%arg0: i32) -> (i32, i32) {
    %c0_i32 = arith.constant 0 : i32
    %c0_i32_0 = arith.constant 0 : i32
    %c0_i32_1 = arith.constant 0 : i32
    return %c0_i32, %c0_i32_0 : i32, i32
  }
  func.func @transform_2(%arg0: i32) -> (i32, i32) {
    %c0_i32 = arith.constant 0 : i32
    %c0_i32_0 = arith.constant 0 : i32
    %c0_i32_1 = arith.constant 0 : i32
    return %c0_i32, %c0_i32_0 : i32, i32
  }
  func.func @transform_3(%arg0: i32) -> (i32, i32) {
    %c0_i32 = arith.constant 0 : i32
    %c0_i32_0 = arith.constant 0 : i32
    return %arg0, %c0_i32 : i32, i32
  }
}

module attributes {stable_mosaic.version = 11 : i64} {
  func.func @_bn_relu_add_stats_kernel(%arg0: i32, %arg1: memref<64x128xf32, #tpu.memory_space<vmem>>, %arg2: memref<64x128xf32, #tpu.memory_space<vmem>>, %arg3: memref<1x128xf32, #tpu.memory_space<vmem>>, %arg4: memref<1x128xf32, #tpu.memory_space<vmem>>, %arg5: memref<1x128xf32, #tpu.memory_space<vmem>>, %arg6: memref<1x128xf32, #tpu.memory_space<vmem>>, %arg7: memref<64x128xf32, #tpu.memory_space<vmem>>, %arg8: memref<1x8x128xf32, #tpu.memory_space<vmem>>, %arg9: memref<1x8x128xf32, #tpu.memory_space<vmem>>) attributes {dimension_semantics = [#tpu.dimension_semantics<parallel>], iteration_bounds = array<i64: 2>, scalar_prefetch = 0 : i64, scratch_operands = 0 : i64, tpu.core_type = #tpu.core_type<tc>, window_params = [{transform_indices = @transform_0, window_bounds = array<i64: 64, 128>}, {transform_indices = @transform_1, window_bounds = array<i64: 64, 128>}, {pipeline_mode = #tpu.pipeline_mode<synchronous>, transform_indices = @transform_2, window_bounds = array<i64: 1, 128>}, {pipeline_mode = #tpu.pipeline_mode<synchronous>, transform_indices = @transform_3, window_bounds = array<i64: 1, 128>}, {pipeline_mode = #tpu.pipeline_mode<synchronous>, transform_indices = @transform_4, window_bounds = array<i64: 1, 128>}, {pipeline_mode = #tpu.pipeline_mode<synchronous>, transform_indices = @transform_5, window_bounds = array<i64: 1, 128>}, {transform_indices = @transform_6, window_bounds = array<i64: 64, 128>}, {transform_indices = @transform_7, window_bounds = array<i64: 1, 8, 128>}, {transform_indices = @transform_8, window_bounds = array<i64: 1, 8, 128>}]} {
    %c64_i32 = arith.constant 64 : i32
    %0 = arith.muli %arg0, %c64_i32 : i32
    %c0 = arith.constant 0 : index
    %c0_0 = arith.constant 0 : index
    %1 = vector.load %arg1[%c0, %c0_0] : memref<64x128xf32, #tpu.memory_space<vmem>>, vector<64x128xf32>
    %c0_1 = arith.constant 0 : index
    %c0_2 = arith.constant 0 : index
    %2 = vector.load %arg3[%c0_1, %c0_2] : memref<1x128xf32, #tpu.memory_space<vmem>>, vector<1x128xf32>
    %3 = vector.broadcast %2 : vector<1x128xf32> to vector<64x128xf32>
    %4 = arith.mulf %1, %3 : vector<64x128xf32>
    %c0_3 = arith.constant 0 : index
    %c0_4 = arith.constant 0 : index
    %5 = vector.load %arg4[%c0_3, %c0_4] : memref<1x128xf32, #tpu.memory_space<vmem>>, vector<1x128xf32>
    %6 = vector.broadcast %5 : vector<1x128xf32> to vector<64x128xf32>
    %7 = arith.addf %4, %6 : vector<64x128xf32>
    %cst = arith.constant 0.000000e+00 : f32
    %8 = vector.broadcast %cst : f32 to vector<64x128xf32>
    %9 = arith.maximumf %7, %8 : vector<64x128xf32>
    %c0_5 = arith.constant 0 : index
    %c0_6 = arith.constant 0 : index
    %10 = vector.load %arg2[%c0_5, %c0_6] : memref<64x128xf32, #tpu.memory_space<vmem>>, vector<64x128xf32>
    %c0_7 = arith.constant 0 : index
    %c0_8 = arith.constant 0 : index
    %11 = vector.load %arg5[%c0_7, %c0_8] : memref<1x128xf32, #tpu.memory_space<vmem>>, vector<1x128xf32>
    %12 = vector.broadcast %11 : vector<1x128xf32> to vector<64x128xf32>
    %13 = arith.mulf %10, %12 : vector<64x128xf32>
    %c0_9 = arith.constant 0 : index
    %c0_10 = arith.constant 0 : index
    %14 = vector.load %arg6[%c0_9, %c0_10] : memref<1x128xf32, #tpu.memory_space<vmem>>, vector<1x128xf32>
    %15 = vector.broadcast %14 : vector<1x128xf32> to vector<64x128xf32>
    %16 = arith.addf %13, %15 : vector<64x128xf32>
    %17 = arith.addf %9, %16 : vector<64x128xf32>
    %c0_11 = arith.constant 0 : index
    %c0_12 = arith.constant 0 : index
    %18 = vector.load %arg7[%c0_11, %c0_12] : memref<64x128xf32, #tpu.memory_space<vmem>>, vector<64x128xf32>
    tpu.vector_store %arg7[%c0_11, %c0_12], %17 {strides = array<i32>} : memref<64x128xf32, #tpu.memory_space<vmem>>, vector<64x128xf32>,
    %19 = tpu.iota {dimensions = array<i32: 0>} : vector<64x128xi32>
    %20 = vector.broadcast %0 : i32 to vector<64x128xi32>
    %21 = arith.addi %20, %19 : vector<64x128xi32>
    %c128_i32 = arith.constant 128 : i32
    %22 = vector.broadcast %c128_i32 : i32 to vector<64x128xi32>
    %23 = arith.cmpi slt, %21, %22 : vector<64x128xi32>
    %cst_13 = arith.constant 0.000000e+00 : f32
    %24 = vector.broadcast %cst_13 : f32 to vector<64x128xf32>
    %25 = arith.select %23, %17, %24 : vector<64x128xi1>, vector<64x128xf32>
    %26 = vector.shape_cast %25 : vector<64x128xf32> to vector<8x8x128xf32>
    %cst_14 = arith.constant dense<0.000000e+00> : vector<8x128xf32>
    %27 = vector.multi_reduction <add>, %26, %cst_14 [0] : vector<8x8x128xf32> to vector<8x128xf32>
    %28 = vector.shape_cast %27 : vector<8x128xf32> to vector<1x8x128xf32>
    %c0_15 = arith.constant 0 : index
    %c0_16 = arith.constant 0 : index
    %c0_17 = arith.constant 0 : index
    %29 = vector.load %arg8[%c0_15, %c0_16, %c0_17] : memref<1x8x128xf32, #tpu.memory_space<vmem>>, vector<1x8x128xf32>
    tpu.vector_store %arg8[%c0_15, %c0_16, %c0_17], %28 {strides = array<i32>} : memref<1x8x128xf32, #tpu.memory_space<vmem>>, vector<1x8x128xf32>,
    %30 = arith.mulf %26, %26 : vector<8x8x128xf32>
    %cst_18 = arith.constant dense<0.000000e+00> : vector<8x128xf32>
    %31 = vector.multi_reduction <add>, %30, %cst_18 [0] : vector<8x8x128xf32> to vector<8x128xf32>
    %32 = vector.shape_cast %31 : vector<8x128xf32> to vector<1x8x128xf32>
    %c0_19 = arith.constant 0 : index
    %c0_20 = arith.constant 0 : index
    %c0_21 = arith.constant 0 : index
    %33 = vector.load %arg9[%c0_19, %c0_20, %c0_21] : memref<1x8x128xf32, #tpu.memory_space<vmem>>, vector<1x8x128xf32>
    tpu.vector_store %arg9[%c0_19, %c0_20, %c0_21], %32 {strides = array<i32>} : memref<1x8x128xf32, #tpu.memory_space<vmem>>, vector<1x8x128xf32>,
    return
  }
  func.func @transform_0(%arg0: i32) -> (i32, i32) {
    %c0_i32 = arith.constant 0 : i32
    %c0_i32_0 = arith.constant 0 : i32
    return %arg0, %c0_i32 : i32, i32
  }
  func.func @transform_1(%arg0: i32) -> (i32, i32) {
    %c1_i32 = arith.constant 1 : i32
    %c0_i32 = arith.constant 0 : i32
    return %arg0, %c1_i32 : i32, i32
  }
  func.func @transform_2(%arg0: i32) -> (i32, i32) {
    %c0_i32 = arith.constant 0 : i32
    %c0_i32_0 = arith.constant 0 : i32
    %c0_i32_1 = arith.constant 0 : i32
    return %c0_i32, %c0_i32_0 : i32, i32
  }
  func.func @transform_3(%arg0: i32) -> (i32, i32) {
    %c0_i32 = arith.constant 0 : i32
    %c0_i32_0 = arith.constant 0 : i32
    %c0_i32_1 = arith.constant 0 : i32
    return %c0_i32, %c0_i32_0 : i32, i32
  }
  func.func @transform_4(%arg0: i32) -> (i32, i32) {
    %c0_i32 = arith.constant 0 : i32
    %c0_i32_0 = arith.constant 0 : i32
    %c0_i32_1 = arith.constant 0 : i32
    return %c0_i32, %c0_i32_0 : i32, i32
  }
  func.func @transform_5(%arg0: i32) -> (i32, i32) {
    %c0_i32 = arith.constant 0 : i32
    %c0_i32_0 = arith.constant 0 : i32
    %c0_i32_1 = arith.constant 0 : i32
    return %c0_i32, %c0_i32_0 : i32, i32
  }
  func.func @transform_6(%arg0: i32) -> (i32, i32) {
    %c0_i32 = arith.constant 0 : i32
    %c0_i32_0 = arith.constant 0 : i32
    return %arg0, %c0_i32 : i32, i32
  }
  func.func @transform_7(%arg0: i32) -> (i32, i32, i32) {
    %c0_i32 = arith.constant 0 : i32
    %c0_i32_0 = arith.constant 0 : i32
    %c0_i32_1 = arith.constant 0 : i32
    return %arg0, %c0_i32, %c0_i32_0 : i32, i32, i32
  }
  func.func @transform_8(%arg0: i32) -> (i32, i32, i32) {
    %c0_i32 = arith.constant 0 : i32
    %c0_i32_0 = arith.constant 0 : i32
    %c0_i32_1 = arith.constant 0 : i32
    return %arg0, %c0_i32, %c0_i32_0 : i32, i32, i32
  }
}

</mosaic_0001>

<bundles_post_ra>
// kernel: basic_block_forward.6
= control target key start
LH: loop header
LB: loop body
LE: loop exit
PB: predicated region body
PF: predicated region fallthrough
CT: control target
= control target key end

     0   :  { %s510_s12 = smov 0   ;;  %s512_s13 = smov 0   ;;  %s571_s0 = inlined_call_operand.vmem [shape: f32[128,256], index: 0, kind: input, shape index: {}]   ;;  %s572_s1 = inlined_call_operand.vmem [shape: f32[1,128], index: 1, kind: input, shape index: {}]   ;;  %s573_s2 = inlined_call_operand.vmem [shape: f32[1,128], index: 2, kind: input, shape index: {}]   ;;  %s574_s3 = inlined_call_operand.vmem [shape: bf16[128,128], index: 3, kind: output, shape index: {}]  }
   0x1   :  { %s514_s14 = smov 0  }
   0x2 LB: > { %s385_s15 = sadd.s32 4294967295, %s488_s14   ;;  %s527_s16 = sadd.s32 1, %s488_s14   ;;  %s488_s14 = sphi %s514_s14, %s577_s14   ;;  %s484_s13 = sphi %s512_s13, %s576_s13   ;;  %s480_s12 = sphi %s510_s12, %s575_s12  }
   0x3   : > { %s17_s17 = ssub.s32 %s488_s14, %s527_s16  ;;  %s20_s18 = sadd.s32 1, %s484_s13 }
   0x4   : > { %p18_p0 = scmp.eq.s32.totalorder %s17_s17, 0  ;;  %p27_p1 = scmp.ne.s32.totalorder %s484_s13, %s480_s12 }
   0x5   : > { %p28_p2 = scmp.eq.s32.totalorder %s488_s14, 0  ;;  %p388_p4 = scmp.ge.s32.totalorder %s488_s14, 2 }
   0x6   : > { %s536_s19 = scalar_select %p18_p0, %s484_s13, %s20_s18  }
   0x7   : > { %p29_p3 = por %p28_p2, %p27_p1  ;;  %127 = sbr.rel (%p388_p4) target bundleno = 22 (0x16), region = 24 }
   0xe   : > { %130 = sbr.rel (!%p29_p3) target bundleno = 22 (0x16), region = 28  ;;  %s132_s20 = sand.u32 (%p29_p3), 1, %s484_s13  }
   0xf   : > { %s410_s21 = sshll.u32 (%p29_p3), %s488_s14, 7  ;;  %s389_s22 = sshll.u32 (%p29_p3), %s132_s20, 6 }
  0x10   : > { %s138_s25 = scalar_lea.vmem (%p29_p3), %s571_s0, %s410_s21  ;;  %s134_s26 = scalar_lea.vmem (%p29_p3), [#allocation2], %s389_s22 }
  0x11   : > { %v180_v0 = vld [vmem:[%s138_s25] sm:$0xff] (%p29_p3)  ;;  %v182_v1 = vld [vmem:[%s138_s25 + $0x10] sm:$0xff] (%p29_p3) }
  0x12   : > { %v184_v2 = vld [vmem:[%s138_s25 + $0x20] sm:$0xff] (%p29_p3)  ;;  %181 = vst [vmem:[%s134_s26] sm:$0xff] (%p29_p3), %v180_v0  ;;  %183 = vst [vmem:[%s134_s26 + $0x8] sm:$0xff] (%p29_p3), %v182_v1  ;;  %v186_v3 = vld [vmem:[%s138_s25 + $0x30] sm:$0xff] (%p29_p3) }
  0x13   : > { %185 = vst [vmem:[%s134_s26 + $0x10] sm:$0xff] (%p29_p3), %v184_v2  ;;  %v188_v4 = vld [vmem:[%s138_s25 + $0x40] sm:$0xff] (%p29_p3)  ;;  %v190_v5 = vld [vmem:[%s138_s25 + $0x50] sm:$0xff] (%p29_p3)  ;;  %187 = vst [vmem:[%s134_s26 + $0x18] sm:$0xff] (%p29_p3), %v186_v3 }
  0x14   : > { %189 = vst [vmem:[%s134_s26 + $0x20] sm:$0xff] (%p29_p3), %v188_v4  ;;  %191 = vst [vmem:[%s134_s26 + $0x28] sm:$0xff] (%p29_p3), %v190_v5  ;;  %v192_v6 = vld [vmem:[%s138_s25 + $0x60] sm:$0xff] (%p29_p3)  ;;  %v194_v7 = vld [vmem:[%s138_s25 + $0x70] sm:$0xff] (%p29_p3) }
  0x15   : > { %193 = vst [vmem:[%s134_s26 + $0x30] sm:$0xff] %v192_v6  ;;  %195 = vst [vmem:[%s134_s26 + $0x38] sm:$0xff] %v194_v7 }
  0x16 PF: > { %p393_p5 = scmp.ge.s32.totalorder %s488_s14, 1  ;;  %p200_p6 = scmp.lt.s32.totalorder %s488_s14, 3 }
  0x18   : > { %p201_p7 = pnand %p393_p5, %p200_p6 }
  0x19   : > { %s207_s27 = sand.u32 (!%p201_p7), 1, %s480_s12   ;;  %s395_s28 = sshll.u32 (!%p201_p7), %s385_s15, 3  ;;  %v397_v8 = vld [vmem:[%s572_s1] ss:$0 sm:$0xff] (!%p201_p7) }
  0x1a   : > { %204 = sbr.rel (%p201_p7) target bundleno = 41 (0x29), region = 66  ;;  %s394_s29 = sshll.u32 (!%p201_p7), %s207_s27, 6  ;;  %v398_v9 = vld [vmem:[%s573_s2] ss:$0 sm:$0xff] (!%p201_p7) }
  0x1b   : > { %p232_p8 = scmp.lt.s32.totalorder (!%p201_p7), %s395_s28, 15  ;;  %s209_s7 = scalar_lea.vmem (!%p201_p7), [#allocation2], %s394_s29 }
  0x1c   : > { %v237_v10 = vld [vmem:[%s209_s7] sm:$0xff] (!%p201_p7)  ;;  %v238_v11 = vld [vmem:[%s209_s7 + $0x8] sm:$0xff] (!%p201_p7)  ;;  %v239_v12 = vld [vmem:[%s209_s7 + $0x10] sm:$0xff] (!%p201_p7) }
  0x1d   : > { %v252_v13 = vmul.f32 (!%p201_p7), %v397_v8, %v237_v10  ;;  %v253_v14 = vmul.f32 (!%p201_p7), %v397_v8, %v238_v11  ;;  %v240_v15 = vld [vmem:[%s209_s7 + $0x18] sm:$0xff] (!%p201_p7)  ;;  %v254_v16 = vmul.f32 (!%p201_p7), %v397_v8, %v239_v12  ;;  %v241_v17 = vld [vmem:[%s209_s7 + $0x20] sm:$0xff] (!%p201_p7)  ;;  %v242_v18 = vld [vmem:[%s209_s7 + $0x28] sm:$0xff] (!%p201_p7) }
  0x1e   : > { %v255_v19 = vmul.f32 (!%p201_p7), %v397_v8, %v240_v15  ;;  %v256_v20 = vmul.f32 (!%p201_p7), %v397_v8, %v241_v17  ;;  %v257_v21 = vmul.f32 (!%p201_p7), %v397_v8, %v242_v18  ;;  %v243_v22 = vld [vmem:[%s209_s7 + $0x30] sm:$0xff] (!%p201_p7)  ;;  %v244_v23 = vld [vmem:[%s209_s7 + $0x38] sm:$0xff] (!%p201_p7) }
  0x1f   : > { %v267_v24 = vadd.f32 (!%p201_p7), %v398_v9, %v252_v13  ;;  %v268_v25 = vadd.f32 (!%p201_p7), %v398_v9, %v253_v14  ;;  %v269_v26 = vadd.f32 (!%p201_p7), %v398_v9, %v254_v16  ;;  %v258_v27 = vmul.f32 (!%p201_p7), %v397_v8, %v243_v22 }
  0x20   : > { %v270_v28 = vadd.f32 (!%p201_p7), %v398_v9, %v255_v19  ;;  %v271_v29 = vadd.f32 (!%p201_p7), %v398_v9, %v256_v20  ;;  %v272_v30 = vadd.f32 (!%p201_p7), %v398_v9, %v257_v21  ;;  %v259_v31 = vmul.f32 (!%p201_p7), %v397_v8, %v244_v23 }
  0x21   : > { %s579_s28 = smov (!%p232_p8, %s395_s28), 15  ;;  %v275_v32 = vmax.f32 %v267_v24, 0.0  ;;  %v276_v33 = vmax.f32 %v268_v25, 0.0  ;;  %v277_v34 = vmax.f32 %v269_v26, 0.0  ;;  %v273_v35 = vadd.f32 %v398_v9, %v258_v27 }
  0x22   : > { %s396_s8 = sshll.u32 %s579_s28, 2  ;;  %v278_v36 = vmax.f32 %v270_v28, 0.0  ;;  %v279_v37 = vmax.f32 %v271_v29, 0.0  ;;  %v280_v38 = vmax.f32 %v272_v30, 0.0  ;;  %v274_v39 = vadd.f32 %v398_v9, %v259_v31 }
  0x23   : > { %s235_s11 = scalar_lea.vmem %s574_s3, %s396_s8  ;;  %v422_v40 = vpack.c.bf16 %v276_v33, %v275_v32  ;;  %v281_v41 = vmax.f32 %v273_v35, 0.0 }
  0x24   : > { %v427_v42 = vpack.c.bf16 %v278_v36, %v277_v34  ;;  %v432_v43 = vpack.c.bf16 %v280_v38, %v279_v37  ;;  %v282_v44 = vmax.f32 %v274_v39, 0.0 }
  0x25   : > { %423 = vst [vmem:[%s235_s11] sm:$0xff] %v422_v40  }
  0x26   : > { %439 = vst [vmem:[%s235_s11 + $0x8] sm:$0xff] %v427_v42   ;;  %440 = vst [vmem:[%s235_s11 + $0x10] sm:$0xff] %v432_v43   ;;  %v437_v45 = vpack.c.bf16 %v282_v44, %v281_v41 }
  0x28   : > { %441 = vst [vmem:[%s235_s11 + $0x18] sm:$0xff] %v437_v45  }
  0x29 PF: > { %p10_p9 = scmp.ge.s32.totalorder %s527_s16, 4   ;;  %s575_s12 = smov %s484_s13 }
  0x2a   : > { %s576_s13 = smov %s536_s19  ;;  %s577_s14 = smov %s527_s16 }
  0x2b   :  { %12 = sbr.rel (!%p10_p9) target bundleno = 2 (0x2), region = 105 }

// kernel: basic_block_forward.5
= control target key start
LH: loop header
LB: loop body
LE: loop exit
PB: predicated region body
PF: predicated region fallthrough
CT: control target
= control target key end

     0   :  { %s663_s15 = smov 0   ;;  %s729_s0 = inlined_call_operand.vmem [shape: bf16[128,36], index: 0, kind: input, shape index: {}]   ;;  %s730_s1 = inlined_call_operand.vmem [shape: bf16[36,256], index: 1, kind: input, shape index: {}]   ;;  %s731_s2 = inlined_call_operand.vmem [shape: f32[128,256], index: 2, kind: output, shape index: {0}]   ;;  %s732_s3 = inlined_call_operand.vmem [shape: f32[2,8,256], index: 3, kind: output, shape index: {1}]   ;;  %s733_s4 = inlined_call_operand.vmem [shape: f32[2,8,256], index: 4, kind: output, shape index: {2}]  }
   0x1 LB: > { %s669_s16 = sadd.s32 4294967295, %s635_s15   ;;  %p572_p0 = scmp.ge.s32.totalorder %s635_s15, 1  ;;  %s635_s15 = sphi %s663_s15, %s15_s15  }
   0x2   : > { %p168_p1 = scmp.lt.s32.totalorder %s635_s15, 3 }
   0x4   : > { %p169_p2 = pnand %p572_p0, %p168_p1 }
   0x5   : > { %v617_v0 = vld [vmem:[%s730_s1 + $0x4] ss:$8 sps:$4 sm:$0xff] (!%p169_p2)   ;;  %v619_v1 = vld [vmem:[%s730_s1] ss:$8 sps:$4 sm:$0xff] (!%p169_p2)   ;;  %v637_v2 = vmov (!%p169_p2), 0   ;;  %s573_s21 = sshll.u32 (!%p169_p2), %s669_s16, 3 }
   0x6   : > { %172 = sbr.rel (%p169_p2) target bundleno = 255 (0xff), region = 28  ;;  %339 = vmatprep.mubr.bf16.mxu0 (!%p169_p2), %v637_v2  ;;  %359 = vmatprep.mubr.bf16.mxu1 (!%p169_p2), %v637_v2  ;;  %v620_v3 = vld [vmem:[%s730_s1 + $0x14] ss:$8 sps:$4 sm:$0xff] (!%p169_p2)   ;;  %v241_v4 = vld [vmem:[%s730_s1 + $0x20] sm:$0x33] (!%p169_p2)  ;;  %p206_p3 = scmp.lt.s32.totalorder (!%p169_p2), %s573_s21, 15 }
   0x7   : > { %307 = vmatprep.subr.bf16.mxu0 (!%p169_p2), %v617_v0  ;;  %602 = vmatprep.subr.bf16.mxu1 (!%p169_p2), %v617_v0  ;;  %v622_v5 = vld [vmem:[%s730_s1 + $0x10] ss:$8 sps:$4 sm:$0xff] (!%p169_p2)   ;;  %v591_v6 = vcombine.high (!%p169_p2), %v241_v4, %v241_v4  ;;  %v590_v7 = vcombine.low (!%p169_p2), %v241_v4, %v241_v4  ;;  %vm300_vm0 = vcmask (!%p169_p2), 1041408   ;;  %vm287_vm1 = vcmask (!%p169_p2), 293888   ;;  %p218_p4 = scmp.lt.s32.totalorder (!%p169_p2), %s669_s16, 1 }
   0x8   : > { %308 = vmatpush1.bf16.msra.mxu0 (!%p169_p2), %v619_v1  ;;  %605 = vmatpush1.bf16.msra.mxu1 (!%p169_p2), %v619_v1 }
   0x9   : > { %309 = vmatprep.subr.bf16.mxu0 (!%p169_p2), %v620_v3  ;;  %603 = vmatprep.subr.bf16.mxu1 (!%p169_p2), %v620_v3  ;;  %v302_v8 = vsel (!%p169_p2), %vm300_vm0, %v590_v7, 0 }
   0xc   : > { %310 = vmatpush1.bf16.msra.mxu0 (!%p169_p2), %v622_v5  ;;  %606 = vmatpush1.bf16.msra.mxu1 (!%p169_p2), %v622_v5 }
   0xd   : > { %s735_s21 = smov (!%p206_p3, %s573_s21), 15  ;;  %592 = vmatprep.subr.msk.bf16.mxu0 %vm300_vm0, %v591_v6  ;;  %604 = vmatprep.subr.msk.bf16.mxu1 %vm300_vm0, %v591_v6  ;;  %s737_s16 = smov (!%p218_p4, %s669_s16), 1 }
   0xe   : > { %s574_s28 = sshll.u32 %s735_s21, 2  ;;  %s599_s6 = sshll.u32 %s735_s21, 4 }
   0xf   : > { %s209_s5 = scalar_lea.vmem %s729_s0, %s574_s28  ;;  %s695_s9 = scalar_lea.vmem %s731_s2, %s599_s6 }
  0x10   : > { %v625_v9 = vld [vmem:[%s209_s5] sm:$0xff]   ;;  %v626_v10 = vld [vmem:[%s209_s5 + $0x10] sm:$0xff]   ;;  %312 = vmatpush1.bf16.msra.mxu0 %v302_v8  ;;  %607 = vmatpush1.bf16.msra.mxu1 %v302_v8  ;;  %v627_v11 = vld [vmem:[%s209_s5 + $0x8] sm:$0xff]   ;;  %s600_s10 = sshll.u32 %s737_s16, 4 }
  0x11   : > { %v628_v12 = vld [vmem:[%s209_s5 + $0x18] sm:$0xff]   ;;  %s222_s13 = scalar_lea.vmem %s732_s3, %s600_s10  ;;  %s227_s16 = scalar_lea.vmem %s733_s4, %s600_s10 }
  0x13   : > { %593 = vmatmul.mubr.msk.bf16.vlgmr.msra.gmra.mrb[0].mxu0 %vm287_vm1, %v625_v9  ;;  %595 = vmatmul.mubr.msk.bf16.vlgmr.msra.gmra.mrb[0].mxu1 %vm287_vm1, %v626_v10 }
  0x14   : > { %349 = vmatprep.mubr.bf16.mxu0 %v637_v2  ;;  %369 = vmatprep.mubr.bf16.mxu1 %v637_v2 }
  0x1b   : > { %594 = vmatmul.mubr.msk.bf16.gmra.mrb[4].mxu0 %vm287_vm1, %v627_v11  ;;  %596 = vmatmul.mubr.msk.bf16.gmra.mrb[4].mxu1 %vm287_vm1, %v628_v12 }
  0xe6   : > { %v341_v13 = vpop.f32.mrb[0].mxu0  ;;  %v361_v14 = vpop.f32.mrb[0].mxu1 }
  0xe7   : > { %380 = vst [vmem:[%s695_s9] sm:$0xff] %v341_v13  ;;  %v343_v15 = vpop.f32.mrb[1].mxu0  ;;  %388 = vst [vmem:[%s695_s9 + $0x40] sm:$0xff] %v361_v14  ;;  %v363_v16 = vpop.f32.mrb[1].mxu1  ;;  %v412_v19 = vmul.f32 %v341_v13, %v341_v13  ;;  %v420_v47 = vmul.f32 %v361_v14, %v361_v14 }
  0xe8   : > { %381 = vst [vmem:[%s695_s9 + $0x8] sm:$0xff] %v343_v15  ;;  %v345_v17 = vpop.f32.mrb[2].mxu0  ;;  %389 = vst [vmem:[%s695_s9 + $0x48] sm:$0xff] %v363_v16  ;;  %v365_v18 = vpop.f32.mrb[2].mxu1  ;;  %v413_v24 = vmul.f32 %v343_v15, %v343_v15  ;;  %v421_v50 = vmul.f32 %v363_v16, %v363_v16 }
  0xe9   : > { %382 = vst [vmem:[%s695_s9 + $0x10] sm:$0xff] %v345_v17  ;;  %v396_v20 = vadd.f32 %v345_v17, %v341_v13  ;;  %v414_v21 = vmul.f32 %v345_v17, %v345_v17  ;;  %v347_v22 = vpop.f32.mrb[3].mxu0  ;;  %390 = vst [vmem:[%s695_s9 + $0x50] sm:$0xff] %v365_v18  ;;  %v367_v23 = vpop.f32.mrb[3].mxu1  ;;  %v422_v53 = vmul.f32 %v365_v18, %v365_v18 }
  0xea   : > { %383 = vst [vmem:[%s695_s9 + $0x18] sm:$0xff] %v347_v22  ;;  %v403_v25 = vadd.f32 %v347_v22, %v343_v15  ;;  %v415_v26 = vmul.f32 %v347_v22, %v347_v22  ;;  %391 = vst [vmem:[%s695_s9 + $0x58] sm:$0xff] %v367_v23  ;;  %v423_v57 = vmul.f32 %v367_v23, %v367_v23 }
  0xeb   : > { %v428_v27 = vadd.f32 %v414_v21, %v412_v19 }
  0xec   : > { %v435_v28 = vadd.f32 %v415_v26, %v413_v24 }
  0xee   : > { %v351_v29 = vpop.f32.mrb[4].mxu0  ;;  %v371_v30 = vpop.f32.mrb[4].mxu1 }
  0xef   : > { %384 = vst [vmem:[%s695_s9 + $0x20] sm:$0xff] %v351_v29  ;;  %v397_v31 = vadd.f32 %v396_v20, %v351_v29  ;;  %v416_v32 = vmul.f32 %v351_v29, %v351_v29  ;;  %v353_v33 = vpop.f32.mrb[5].mxu0  ;;  %392 = vst [vmem:[%s695_s9 + $0x60] sm:$0xff] %v371_v30  ;;  %v373_v34 = vpop.f32.mrb[5].mxu1  ;;  %v424_v56 = vmul.f32 %v371_v30, %v371_v30 }
  0xf0   : > { %385 = vst [vmem:[%s695_s9 + $0x28] sm:$0xff] %v353_v33  ;;  %v404_v35 = vadd.f32 %v403_v25, %v353_v33  ;;  %v417_v36 = vmul.f32 %v353_v33, %v353_v33  ;;  %v355_v37 = vpop.f32.mrb[6].mxu0  ;;  %393 = vst [vmem:[%s695_s9 + $0x68] sm:$0xff] %v373_v34  ;;  %v375_v38 = vpop.f32.mrb[6].mxu1  ;;  %v425_v60 = vmul.f32 %v373_v34, %v373_v34 }
  0xf1   : > { %v429_v39 = vadd.f32 %v428_v27, %v416_v32  ;;  %386 = vst [vmem:[%s695_s9 + $0x30] sm:$0xff] %v355_v37  ;;  %v398_v40 = vadd.f32 %v397_v31, %v355_v37  ;;  %v418_v41 = vmul.f32 %v355_v37, %v355_v37  ;;  %v357_v42 = vpop.f32.mrb[7].mxu0  ;;  %394 = vst [vmem:[%s695_s9 + $0x70] sm:$0xff] %v375_v38  ;;  %v377_v43 = vpop.f32.mrb[7].mxu1 }
  0xf2   : > { %v436_v44 = vadd.f32 %v435_v28, %v417_v36  ;;  %387 = vst [vmem:[%s695_s9 + $0x38] sm:$0xff] %v357_v42  ;;  %v405_v45 = vadd.f32 %v404_v35, %v357_v42  ;;  %v419_v46 = vmul.f32 %v357_v42, %v357_v42  ;;  %395 = vst [vmem:[%s695_s9 + $0x78] sm:$0xff] %v377_v43 }
  0xf3   : > { %v399_v48 = vadd.f32 %v398_v40, %v361_v14  ;;  %v430_v49 = vadd.f32 %v429_v39, %v418_v41  ;;  %v426_v3 = vmul.f32 %v375_v38, %v375_v38  ;;  %v427_v6 = vmul.f32 %v377_v43, %v377_v43 }
  0xf4   : > { %v406_v51 = vadd.f32 %v405_v45, %v363_v16  ;;  %v437_v52 = vadd.f32 %v436_v44, %v419_v46 }
  0xf5   : > { %v431_v54 = vadd.f32 %v430_v49, %v420_v47  ;;  %v400_v55 = vadd.f32 %v399_v48, %v365_v18 }
  0xf6   : > { %v438_v58 = vadd.f32 %v437_v52, %v421_v50  ;;  %v407_v59 = vadd.f32 %v406_v51, %v367_v23 }
  0xf7   : > { %v401_v61 = vadd.f32 %v400_v55, %v371_v30  ;;  %v432_v62 = vadd.f32 %v431_v54, %v422_v53 }
  0xf8   : > { %v408_v63 = vadd.f32 %v407_v59, %v373_v34  ;;  %v439_v0 = vadd.f32 %v438_v58, %v423_v57 }
  0xf9   : > { %v433_v1 = vadd.f32 %v432_v62, %v424_v56  ;;  %v402_v2 = vadd.f32 %v401_v61, %v375_v38 }
  0xfa   : > { %v440_v4 = vadd.f32 %v439_v0, %v425_v60  ;;  %v409_v5 = vadd.f32 %v408_v63, %v377_v43 }
  0xfb   : > { %v434_v7 = vadd.f32 %v433_v1, %v426_v3  ;;  %410 = vst [vmem:[%s222_s13] sm:$0xff] %v402_v2 }
  0xfc   : > { %411 = vst [vmem:[%s222_s13 + $0x8] sm:$0xff] %v409_v5  ;;  %v441_v8 = vadd.f32 %v440_v4, %v427_v6 }
  0xfd   : > { %442 = vst [vmem:[%s227_s16] sm:$0xff] %v434_v7 }
  0xfe   : > { %443 = vst [vmem:[%s227_s16 + $0x8] sm:$0xff] %v441_v8 }
  0xff PF: > { %s15_s15 = sadd.s32 1, %s635_s15  }
 0x100   : > { %p12_p5 = scmp.ge.s32.totalorder %s15_s15, 4  }
 0x102   :  { %14 = sbr.rel (!%p12_p5) target bundleno = 1 (0x1), region = 82 }

// kernel: basic_block_forward.7
= control target key start
LH: loop header
LB: loop body
LE: loop exit
PB: predicated region body
PF: predicated region fallthrough
CT: control target
= control target key end

     0   :  { %s634_s15 = smov 0   ;;  %s685_s0 = inlined_call_operand.vmem [shape: bf16[128,72], index: 0, kind: input, shape index: {}]   ;;  %s686_s1 = inlined_call_operand.vmem [shape: bf16[72,128], index: 1, kind: input, shape index: {}]   ;;  %s687_s2 = inlined_call_operand.vmem [shape: f32[128,128], index: 2, kind: output, shape index: {0}]   ;;  %s688_s3 = inlined_call_operand.vmem [shape: f32[2,8,128], index: 3, kind: output, shape index: {1}]   ;;  %s689_s4 = inlined_call_operand.vmem [shape: f32[2,8,128], index: 4, kind: output, shape index: {2}]  }
   0x1 LB: > { %s640_s16 = sadd.s32 4294967295, %s607_s15   ;;  %p523_p0 = scmp.ge.s32.totalorder %s607_s15, 1  ;;  %s607_s15 = sphi %s634_s15, %s15_s15  }
   0x2   : > { %p168_p1 = scmp.lt.s32.totalorder %s607_s15, 3 }
   0x4   : > { %p169_p2 = pnand %p523_p0, %p168_p1 }
   0x5   : > { %v592_v0 = vld [vmem:[%s686_s1] sm:$0xff] (!%p169_p2)   ;;  %v593_v1 = vld [vmem:[%s686_s1 + $0x8] sm:$0xff] (!%p169_p2)   ;;  %s524_s21 = sshll.u32 (!%p169_p2), %s640_s16, 3  ;;  %v594_v2 = vld [vmem:[%s686_s1 + $0x10] sm:$0xff] (!%p169_p2)   ;;  %vm287_vm0 = vcmask (!%p169_p2), 588800   ;;  %vm300_vm1 = vcmask (!%p169_p2), 1043456  }
   0x6   : > { %172 = sbr.rel (%p169_p2) target bundleno = 258 (0x102), region = 28  ;;  %554 = vmatprep.subr.bf16.mxu0 (!%p169_p2), %v592_v0  ;;  %572 = vmatprep.subr.bf16.mxu1 (!%p169_p2), %v592_v0  ;;  %p203_p3 = scmp.lt.s32.totalorder (!%p169_p2), %s524_s21, 15  ;;  %v595_v3 = vld [vmem:[%s686_s1 + $0x18] sm:$0xff] (!%p169_p2)   ;;  %v596_v6 = vld [vmem:[%s686_s1 + $0x20] ss:$0 sps:$4 sm:$0xff] (!%p169_p2)  }
   0x7   : > { %555 = vmatpush3.bf16.msra.mxu0 (!%p169_p2), %v592_v0  ;;  %577 = vmatpush3.bf16.msra.mxu1 (!%p169_p2), %v592_v0  ;;  %v302_v7 = vsel (!%p169_p2), %vm300_vm1, %v596_v6, 0  ;;  %p214_p4 = scmp.lt.s32.totalorder (!%p169_p2), %s640_s16, 1 }
   0x8   : > { %556 = vmatprep.subr.bf16.mxu0 (!%p169_p2), %v593_v1  ;;  %573 = vmatprep.subr.bf16.mxu1 (!%p169_p2), %v593_v1 }
   0xb   : > { %557 = vmatpush3.bf16.msra.mxu0 (!%p169_p2), %v593_v1  ;;  %578 = vmatpush3.bf16.msra.mxu1 (!%p169_p2), %v593_v1 }
   0xc   : > { %558 = vmatprep.subr.bf16.mxu0 (!%p169_p2), %v594_v2  ;;  %574 = vmatprep.subr.bf16.mxu1 (!%p169_p2), %v594_v2 }
   0xd   : > { %s691_s21 = smov (!%p203_p3, %s524_s21), 15  ;;  %s693_s16 = smov (!%p214_p4, %s640_s16), 1 }
   0xe   : > { %s525_s24 = sshll.u32 %s691_s21, 2  ;;  %s527_s6 = sshll.u32 %s691_s21, 3 }
   0xf   : > { %s206_s29 = scalar_lea.vmem %s685_s0, %s525_s24  ;;  %559 = vmatpush3.bf16.msra.mxu0 %v594_v2  ;;  %579 = vmatpush3.bf16.msra.mxu1 %v594_v2  ;;  %s212_s9 = scalar_lea.vmem %s687_s2, %s527_s6 }
  0x10   : > { %v597_v4 = vld [vmem:[%s206_s29] sm:$0xff]   ;;  %v599_v5 = vld [vmem:[%s206_s29 + $0x10] sm:$0xff]   ;;  %560 = vmatprep.subr.bf16.mxu0 %v595_v3  ;;  %575 = vmatprep.subr.bf16.mxu1 %v595_v3  ;;  %v598_v8 = vld [vmem:[%s206_s29 + $0x8] sm:$0xff]   ;;  %s528_s10 = sshll.u32 %s693_s16, 3 }
  0x11   : > { %564 = vmatprep.mubr.msk.bf16.mxu0 %vm287_vm0, %v597_v4  ;;  %568 = vmatprep.mubr.msk.bf16.mxu1 %vm287_vm0, %v599_v5  ;;  %v600_v9 = vld [vmem:[%s206_s29 + $0x18] sm:$0xff]   ;;  %s217_s13 = scalar_lea.vmem %s688_s3, %s528_s10  ;;  %s221_s18 = scalar_lea.vmem %s689_s4, %s528_s10 }
  0x13   : > { %561 = vmatpush3.bf16.msra.mxu0 %v595_v3  ;;  %580 = vmatpush3.bf16.msra.mxu1 %v595_v3 }
  0x14   : > { %582 = vmatprep.subr.msk.bf16.mxu0 %vm300_vm1, %v596_v6  ;;  %583 = vmatprep.subr.msk.bf16.mxu1 %vm300_vm1, %v596_v6 }
  0x17   : > { %563 = vmatpush3.bf16.msra.mxu0 %v302_v7  ;;  %581 = vmatpush3.bf16.msra.mxu1 %v302_v7 }
  0x1a   : > { %565 = vmatmul.mubr.msk.bf16.vlgmr.msra.gmra.mrb[0].mxu0 %vm287_vm0, %v598_v8  ;;  %569 = vmatmul.mubr.msk.bf16.vlgmr.msra.gmra.mrb[0].mxu1 %vm287_vm0, %v600_v9 }
  0xed   : > { %v566_v10 = vpop.f32.mrb[0].mxu0  ;;  %v570_v11 = vpop.f32.mrb[0].mxu1 }
  0xee   : > { %371 = vst [vmem:[%s212_s9 + $0x10] sm:$0xff] %v566_v10  ;;  %v338_v12 = vpop.f32.mrb[1].mxu0  ;;  %375 = vst [vmem:[%s212_s9 + $0x30] sm:$0xff] %v570_v11  ;;  %v354_v13 = vpop.f32.mrb[1].mxu1  ;;  %v387_v21 = vmul.f32 %v566_v10, %v566_v10  ;;  %v391_v33 = vmul.f32 %v570_v11, %v570_v11 }
  0xef   : > { %369 = vst [vmem:[%s212_s9] sm:$0xff] %v338_v12  ;;  %v567_v14 = vpop.f32.mrb[2].mxu0  ;;  %373 = vst [vmem:[%s212_s9 + $0x20] sm:$0xff] %v354_v13  ;;  %v571_v15 = vpop.f32.mrb[2].mxu1  ;;  %v385_v18 = vmul.f32 %v338_v12, %v338_v12  ;;  %v389_v27 = vmul.f32 %v354_v13, %v354_v13 }
  0xf0   : > { %372 = vst [vmem:[%s212_s9 + $0x18] sm:$0xff] %v567_v14  ;;  %v341_v16 = vpop.f32.mrb[3].mxu0  ;;  %376 = vst [vmem:[%s212_s9 + $0x38] sm:$0xff] %v571_v15  ;;  %v357_v17 = vpop.f32.mrb[3].mxu1  ;;  %v388_v24 = vmul.f32 %v567_v14, %v567_v14  ;;  %v392_v36 = vmul.f32 %v571_v15, %v571_v15 }
  0xf1   : > { %370 = vst [vmem:[%s212_s9 + $0x8] sm:$0xff] %v341_v16  ;;  %v377_v19 = vadd.f32 %v341_v16, %v338_v12  ;;  %v386_v20 = vmul.f32 %v341_v16, %v341_v16  ;;  %374 = vst [vmem:[%s212_s9 + $0x28] sm:$0xff] %v357_v17  ;;  %v390_v32 = vmul.f32 %v357_v17, %v357_v17 }
  0xf3   : > { %v378_v22 = vadd.f32 %v566_v10, %v377_v19  ;;  %v393_v23 = vadd.f32 %v386_v20, %v385_v18 }
  0xf5   : > { %v394_v25 = vadd.f32 %v393_v23, %v387_v21  ;;  %v379_v26 = vadd.f32 %v567_v14, %v378_v22 }
  0xf7   : > { %v380_v28 = vadd.f32 %v379_v26, %v354_v13  ;;  %v395_v29 = vadd.f32 %v394_v25, %v388_v24 }
  0xf9   : > { %v396_v30 = vadd.f32 %v395_v29, %v389_v27  ;;  %v381_v31 = vadd.f32 %v380_v28, %v357_v17 }
  0xfb   : > { %v382_v34 = vadd.f32 %v570_v11, %v381_v31  ;;  %v397_v35 = vadd.f32 %v396_v30, %v390_v32 }
  0xfd   : > { %v383_v37 = vadd.f32 %v571_v15, %v382_v34  ;;  %v398_v38 = vadd.f32 %v397_v35, %v391_v33 }
  0xff   : > { %384 = vst [vmem:[%s217_s13] sm:$0xff] %v383_v37  ;;  %v399_v39 = vadd.f32 %v398_v38, %v392_v36 }
 0x101   : > { %400 = vst [vmem:[%s221_s18] sm:$0xff] %v399_v39 }
 0x102 PF: > { %s15_s15 = sadd.s32 1, %s607_s15  }
 0x103   : > { %p12_p5 = scmp.ge.s32.totalorder %s15_s15, 4  }
 0x105   :  { %14 = sbr.rel (!%p12_p5) target bundleno = 1 (0x1), region = 82 }

// kernel: basic_block_forward.9
= control target key start
LH: loop header
LB: loop body
LE: loop exit
PB: predicated region body
PF: predicated region fallthrough
CT: control target
= control target key end

     0   :  { %s333_s12 = smov 0   ;;  %s356_s0 = inlined_call_operand.vmem [shape: f32[128,128], index: 0, kind: input, shape index: {}]   ;;  %s357_s1 = inlined_call_operand.vmem [shape: f32[1,128], index: 1, kind: input, shape index: {}]   ;;  %s358_s2 = inlined_call_operand.vmem [shape: f32[1,128], index: 2, kind: input, shape index: {}]   ;;  %s359_s3 = inlined_call_operand.vmem [shape: f32[128,128], index: 3, kind: output, shape index: {}]  }
   0x1 LB: > { %s284_s13 = sadd.s32 4294967295, %s311_s12   ;;  %p288_p0 = scmp.ge.s32.totalorder %s311_s12, 1  ;;  %s311_s12 = sphi %s333_s12, %s13_s12  }
   0x2   : > { %p138_p1 = scmp.lt.s32.totalorder %s311_s12, 3 }
   0x4   : > { %p139_p2 = pnand %p288_p0, %p138_p1 }
   0x5   : > { %s289_s14 = sshll.u32 (!%p139_p2), %s284_s13, 3  ;;  %v293_v0 = vld [vmem:[%s357_s1] ss:$0 sm:$0xff] (!%p139_p2) }
   0x6   : > { %142 = sbr.rel (%p139_p2) target bundleno = 27 (0x1b), region = 32  ;;  %p163_p3 = scmp.lt.s32.totalorder (!%p139_p2), %s289_s14, 15  ;;  %v294_v1 = vld [vmem:[%s358_s2] ss:$0 sm:$0xff] (!%p139_p2) }
   0xd   : > { %s361_s14 = smov (!%p163_p3, %s289_s14), 15 }
   0xe   : > { %s290_s15 = sshll.u32 %s361_s14, 3 }
   0xf   : > { %s166_s20 = scalar_lea.vmem %s356_s0, %s290_s15  ;;  %s172_s25 = scalar_lea.vmem %s359_s3, %s290_s15 }
  0x10   : > { %v174_v2 = vld [vmem:[%s166_s20] sm:$0xff]  ;;  %v175_v3 = vld [vmem:[%s166_s20 + $0x8] sm:$0xff]  ;;  %v176_v4 = vld [vmem:[%s166_s20 + $0x10] sm:$0xff] }
  0x11   : > { %v189_v5 = vmul.f32 %v293_v0, %v174_v2  ;;  %v190_v6 = vmul.f32 %v293_v0, %v175_v3  ;;  %v191_v7 = vmul.f32 %v293_v0, %v176_v4  ;;  %v177_v8 = vld [vmem:[%s166_s20 + $0x18] sm:$0xff]  ;;  %v178_v9 = vld [vmem:[%s166_s20 + $0x20] sm:$0xff]  ;;  %v179_v10 = vld [vmem:[%s166_s20 + $0x28] sm:$0xff] }
  0x12   : > { %v192_v11 = vmul.f32 %v293_v0, %v177_v8  ;;  %v193_v12 = vmul.f32 %v293_v0, %v178_v9  ;;  %v194_v13 = vmul.f32 %v293_v0, %v179_v10  ;;  %v180_v14 = vld [vmem:[%s166_s20 + $0x30] sm:$0xff]  ;;  %v181_v15 = vld [vmem:[%s166_s20 + $0x38] sm:$0xff] }
  0x13   : > { %v204_v16 = vadd.f32 %v294_v1, %v189_v5  ;;  %v205_v17 = vadd.f32 %v294_v1, %v190_v6  ;;  %v206_v18 = vadd.f32 %v294_v1, %v191_v7  ;;  %v195_v19 = vmul.f32 %v293_v0, %v180_v14 }
  0x14   : > { %v207_v20 = vadd.f32 %v294_v1, %v192_v11  ;;  %v208_v21 = vadd.f32 %v294_v1, %v193_v12  ;;  %v209_v22 = vadd.f32 %v294_v1, %v194_v13  ;;  %v196_v23 = vmul.f32 %v293_v0, %v181_v15 }
  0x15   : > { %v212_v24 = vmax.f32 %v204_v16, 0.0  ;;  %v213_v25 = vmax.f32 %v205_v17, 0.0  ;;  %v214_v26 = vmax.f32 %v206_v18, 0.0  ;;  %v210_v27 = vadd.f32 %v294_v1, %v195_v19 }
  0x16   : > { %v215_v28 = vmax.f32 %v207_v20, 0.0  ;;  %v216_v29 = vmax.f32 %v208_v21, 0.0  ;;  %v217_v30 = vmax.f32 %v209_v22, 0.0  ;;  %v211_v31 = vadd.f32 %v294_v1, %v196_v23 }
  0x17   : > { %220 = vst [vmem:[%s172_s25] sm:$0xff] %v212_v24  ;;  %221 = vst [vmem:[%s172_s25 + $0x8] sm:$0xff] %v213_v25  ;;  %v218_v32 = vmax.f32 %v210_v27, 0.0 }
  0x18   : > { %222 = vst [vmem:[%s172_s25 + $0x10] sm:$0xff] %v214_v26  ;;  %223 = vst [vmem:[%s172_s25 + $0x18] sm:$0xff] %v215_v28  ;;  %v219_v33 = vmax.f32 %v211_v31, 0.0 }
  0x19   : > { %224 = vst [vmem:[%s172_s25 + $0x20] sm:$0xff] %v216_v29  ;;  %225 = vst [vmem:[%s172_s25 + $0x28] sm:$0xff] %v217_v30 }
  0x1a   : > { %226 = vst [vmem:[%s172_s25 + $0x30] sm:$0xff] %v218_v32  ;;  %227 = vst [vmem:[%s172_s25 + $0x38] sm:$0xff] %v219_v33 }
  0x1b PF: > { %s13_s12 = sadd.s32 1, %s311_s12  }
  0x1c   : > { %p10_p4 = scmp.ge.s32.totalorder %s13_s12, 4  }
  0x1e   :  { %12 = sbr.rel (!%p10_p4) target bundleno = 1 (0x1), region = 62 }

// kernel: basic_block_forward.8
= control target key start
LH: loop header
LB: loop body
LE: loop exit
PB: predicated region body
PF: predicated region fallthrough
CT: control target
= control target key end

     0   :  { %s837_s27 = smov 0   ;;  %s839_s28 = smov 0   ;;  %s1022_s0 = inlined_call_operand.vmem [shape: f32[128,128], index: 0, kind: input, shape index: {}]   ;;  %s1023_s1 = inlined_call_operand.vmem [shape: f32[128,256], index: 1, kind: input, shape index: {}]   ;;  %s1024_s2 = inlined_call_operand.vmem [shape: f32[1,128], index: 2, kind: input, shape index: {}]   ;;  %s1025_s3 = inlined_call_operand.vmem [shape: f32[1,128], index: 3, kind: input, shape index: {}]   ;;  %s1026_s4 = inlined_call_operand.vmem [shape: f32[1,128], index: 4, kind: input, shape index: {}]   ;;  %s1027_s5 = inlined_call_operand.vmem [shape: f32[1,128], index: 5, kind: input, shape index: {}]   ;;  %s1028_s6 = inlined_call_operand.vmem [shape: f32[128,128], index: 6, kind: output, shape index: {0}]   ;;  %s1029_s7 = inlined_call_operand.vmem [shape: f32[2,8,128], index: 7, kind: output, shape index: {1}]   ;;  %s1030_s8 = inlined_call_operand.vmem [shape: f32[2,8,128], index: 8, kind: output, shape index: {2}]  }
   0x1   :  { %s841_s29 = smov 0  }
   0x2 LB: > { %s853_s30 = sadd.s32 4294967295, %s790_s29   ;;  %s856_s9 = sadd.s32 1, %s790_s29   ;;  %s790_s29 = sphi %s841_s29, %s1033_s29   ;;  %s786_s28 = sphi %s839_s28, %s1032_s28   ;;  %s782_s27 = sphi %s837_s27, %s1031_s27  }
   0x3   : > { %s49_s10 = ssub.s32 %s790_s29, %s856_s9  ;;  %s52_s11 = sadd.s32 1, %s786_s28 }
   0x4   : > { %p50_p0 = scmp.eq.s32.totalorder %s49_s10, 0  ;;  %p59_p1 = scmp.ne.s32.totalorder %s786_s28, %s782_s27 }
   0x5   : > { %p60_p2 = scmp.eq.s32.totalorder %s790_s29, 0  ;;  %p716_p4 = scmp.ge.s32.totalorder %s790_s29, 2 }
   0x6   : > { %s865_s12 = scalar_select %p50_p0, %s786_s28, %s52_s11  }
   0x7   : > { %p61_p3 = por %p60_p2, %p59_p1  ;;  %259 = sbr.rel (%p716_p4) target bundleno = 22 (0x16), region = 32 }
   0xe   : > { %271 = sbr.rel (!%p61_p3) target bundleno = 22 (0x16), region = 40  ;;  %s273_s13 = sand.u32 (%p61_p3), 1, %s786_s28  }
   0xf   : > { %s743_s14 = sshll.u32 (%p61_p3), %s790_s29, 7  ;;  %s717_s15 = sshll.u32 (%p61_p3), %s273_s13, 6 }
  0x10   : > { %s631_s18 = scalar_lea.vmem (%p61_p3), %s1023_s1, %s743_s14  ;;  %s275_s19 = scalar_lea.vmem (%p61_p3), [#allocation2], %s717_s15 }
  0x11   : > { %v720_v0 = vld [vmem:[%s631_s18 + $0x8] sm:$0xff] (%p61_p3)  ;;  %v721_v1 = vld [vmem:[%s631_s18 + $0x18] sm:$0xff] (%p61_p3) }
  0x12   : > { %v722_v2 = vld [vmem:[%s631_s18 + $0x28] sm:$0xff] (%p61_p3)  ;;  %323 = vst [vmem:[%s275_s19] sm:$0xff] (%p61_p3), %v720_v0  ;;  %325 = vst [vmem:[%s275_s19 + $0x8] sm:$0xff] (%p61_p3), %v721_v1  ;;  %v723_v3 = vld [vmem:[%s631_s18 + $0x38] sm:$0xff] (%p61_p3) }
  0x13   : > { %327 = vst [vmem:[%s275_s19 + $0x10] sm:$0xff] (%p61_p3), %v722_v2  ;;  %v724_v4 = vld [vmem:[%s631_s18 + $0x48] sm:$0xff] (%p61_p3)  ;;  %v725_v5 = vld [vmem:[%s631_s18 + $0x58] sm:$0xff] (%p61_p3)  ;;  %329 = vst [vmem:[%s275_s19 + $0x18] sm:$0xff] (%p61_p3), %v723_v3 }
  0x14   : > { %331 = vst [vmem:[%s275_s19 + $0x20] sm:$0xff] (%p61_p3), %v724_v4  ;;  %333 = vst [vmem:[%s275_s19 + $0x28] sm:$0xff] (%p61_p3), %v725_v5  ;;  %v726_v6 = vld [vmem:[%s631_s18 + $0x68] sm:$0xff] (%p61_p3)  ;;  %v727_v7 = vld [vmem:[%s631_s18 + $0x78] sm:$0xff] (%p61_p3) }
  0x15   : > { %335 = vst [vmem:[%s275_s19 + $0x30] sm:$0xff] %v726_v6  ;;  %337 = vst [vmem:[%s275_s19 + $0x38] sm:$0xff] %v727_v7 }
  0x16 PF: > { %p728_p5 = scmp.ge.s32.totalorder %s790_s29, 1  ;;  %p342_p6 = scmp.lt.s32.totalorder %s790_s29, 3 }
  0x18   : > { %p343_p7 = pnand %p728_p5, %p342_p6 }
  0x19   : > { %s349_s20 = sand.u32 (!%p343_p7), 1, %s782_s27   ;;  %s730_s21 = sshll.u32 (!%p343_p7), %s853_s30, 3  ;;  %v517_v8 = vlaneseq (!%p343_p7)  ;;  %v880_v9 = vld [vmem:[%s1026_s4] ss:$0 sm:$0xff] (!%p343_p7) }
  0x1a   : > { %346 = sbr.rel (%p343_p7) target bundleno = 63 (0x3f), region = 78  ;;  %s729_s22 = sshll.u32 (!%p343_p7), %s349_s20, 6  ;;  %v886_v10 = vld [vmem:[%s1027_s5] ss:$0 sm:$0xff] (!%p343_p7) }
  0x1b   : > { %p396_p8 = scmp.lt.s32.totalorder (!%p343_p7), %s730_s21, 15  ;;  %s736_s25 = sshll.u32 (!%p343_p7), %s853_s30, 6  ;;  %v888_v11 = vshrl.u32 (!%p343_p7), %v517_v8, 7  ;;  %v911_v21 = vld [vmem:[%s1024_s2] ss:$0 sm:$0xff] (!%p343_p7) }
  0x1c   : > { %s892_s27 = scalar_lea.vmem (!%p343_p7), [#allocation2], %s729_s22  ;;  %v895_v13 = vstv (!%p343_p7), %s736_s25  ;;  %v927_v26 = vld [vmem:[%s1025_s3] ss:$0 sm:$0xff] (!%p343_p7)  ;;  %p408_p9 = scmp.lt.s32.totalorder (!%p343_p7), %s853_s30, 1 }
  0x1d   : > { %v463_v12 = vld [vmem:[%s892_s27] sm:$0xff] (!%p343_p7)  ;;  %v464_v14 = vld [vmem:[%s892_s27 + $0x8] sm:$0xff] (!%p343_p7)  ;;  %v465_v15 = vld [vmem:[%s892_s27 + $0x10] sm:$0xff] (!%p343_p7)  ;;  %v902_v17 = vadd.s32 (!%p343_p7), %v895_v13, %v888_v11  ;;  %v519_v19 = vadd.s32 (!%p343_p7), 8, %v888_v11  ;;  %v520_v23 = vadd.s32 (!%p343_p7), 16, %v888_v11  ;;  %v521_v25 = vadd.s32 (!%p343_p7), 24, %v888_v11 }
  0x1e   : > { %v478_v16 = vmul.f32 (!%p343_p7), %v880_v9, %v463_v12  ;;  %v479_v18 = vmul.f32 (!%p343_p7), %v880_v9, %v464_v14  ;;  %v466_v20 = vld [vmem:[%s892_s27 + $0x18] sm:$0xff] (!%p343_p7)  ;;  %v480_v22 = vmul.f32 (!%p343_p7), %v880_v9, %v465_v15  ;;  %v467_v30 = vld [vmem:[%s892_s27 + $0x20] sm:$0xff] (!%p343_p7)  ;;  %v522_v52 = vadd.s32 (!%p343_p7), 32, %v888_v11  ;;  %v468_v54 = vld [vmem:[%s892_s27 + $0x28] sm:$0xff] (!%p343_p7) }
  0x1f   : > { %v481_v24 = vmul.f32 (!%p343_p7), %v880_v9, %v466_v20  ;;  %vm535_vm0 = vcmp.lt.s32.totalorder (!%p343_p7), %v902_v17, 128  ;;  %v528_v29 = vadd.s32 (!%p343_p7), %v895_v13, %v519_v19  ;;  %v529_v35 = vadd.s32 (!%p343_p7), %v895_v13, %v520_v23  ;;  %v469_v19 = vld [vmem:[%s892_s27 + $0x30] sm:$0xff] (!%p343_p7) }
  0x20   : > { %v493_v27 = vadd.f32 (!%p343_p7), %v886_v10, %v478_v16  ;;  %v494_v28 = vadd.f32 (!%p343_p7), %v886_v10, %v479_v18  ;;  %v495_v34 = vadd.f32 (!%p343_p7), %v886_v10, %v480_v22  ;;  %v530_v37 = vadd.s32 (!%p343_p7), %v895_v13, %v521_v25 }
  0x21   : > { %s1035_s21 = smov (!%p396_p8, %s730_s21), 15  ;;  %v496_v36 = vadd.f32 %v886_v10, %v481_v24  ;;  %vm536_vm1 = vcmp.lt.s32.totalorder %v528_v29, 128  ;;  %vm537_vm2 = vcmp.lt.s32.totalorder %v529_v35, 128  ;;  %v482_v49 = vmul.f32 %v880_v9, %v467_v30  ;;  %s1037_s30 = smov (!%p408_p9, %s853_s30), 1 }
  0x22   : > { %s731_s29 = sshll.u32 %s1035_s21, 3  ;;  %vm538_vm3 = vcmp.lt.s32.totalorder %v530_v37, 128  ;;  %v531_v61 = vadd.s32 %v895_v13, %v522_v52  ;;  %v483_v2 = vmul.f32 %v880_v9, %v468_v54  ;;  %v523_v24 = vadd.s32 40, %v888_v11  ;;  %s734_s21 = sshll.u32 %s1037_s30, 3 }
  0x23   : > { %s922_s16 = scalar_lea.vmem %s1022_s0, %s731_s29  ;;  %v497_v58 = vadd.f32 %v886_v10, %v482_v49  ;;  %s964_s22 = scalar_lea.vmem %s1028_s6, %s731_s29  ;;  %v524_v35 = vadd.s32 48, %v888_v11 }
  0x24   : > { %v417_v31 = vld [vmem:[%s922_s16] sm:$0xff]  ;;  %v418_v32 = vld [vmem:[%s922_s16 + $0x8] sm:$0xff]  ;;  %v419_v33 = vld [vmem:[%s922_s16 + $0x10] sm:$0xff]  ;;  %vm539_vm4 = vcmp.lt.s32.totalorder %v531_v61, 128  ;;  %v498_v12 = vadd.f32 %v886_v10, %v483_v2  ;;  %s411_s25 = scalar_lea.vmem %s1029_s7, %s734_s21  ;;  %s415_s30 = scalar_lea.vmem %s1030_s8, %s734_s21 }
  0x25   : > { %v432_v38 = vmul.f32 %v911_v21, %v417_v31  ;;  %v433_v39 = vmul.f32 %v911_v21, %v418_v32  ;;  %v434_v40 = vmul.f32 %v911_v21, %v419_v33  ;;  %v420_v41 = vld [vmem:[%s922_s16 + $0x18] sm:$0xff]  ;;  %v421_v42 = vld [vmem:[%s922_s16 + $0x20] sm:$0xff]  ;;  %v422_v43 = vld [vmem:[%s922_s16 + $0x28] sm:$0xff]  ;;  %v532_v32 = vadd.s32 %v895_v13, %v523_v24 }
  0x26   : > { %v435_v44 = vmul.f32 %v911_v21, %v420_v41  ;;  %v436_v45 = vmul.f32 %v911_v21, %v421_v42  ;;  %v437_v53 = vmul.f32 %v911_v21, %v422_v43  ;;  %v423_v17 = vld [vmem:[%s922_s16 + $0x30] sm:$0xff]  ;;  %v424_v25 = vld [vmem:[%s922_s16 + $0x38] sm:$0xff]  ;;  %v533_v42 = vadd.s32 %v895_v13, %v524_v35 }
  0x27   : > { %v447_v46 = vadd.f32 %v927_v26, %v432_v38  ;;  %v448_v47 = vadd.f32 %v927_v26, %v433_v39  ;;  %v449_v48 = vadd.f32 %v927_v26, %v434_v40  ;;  %v438_v33 = vmul.f32 %v911_v21, %v423_v17 }
  0x28   : > { %v450_v50 = vadd.f32 %v927_v26, %v435_v44  ;;  %v451_v51 = vadd.f32 %v927_v26, %v436_v45  ;;  %v452_v62 = vadd.f32 %v927_v26, %v437_v53  ;;  %v439_v38 = vmul.f32 %v911_v21, %v424_v25 }
  0x29   : > { %v455_v55 = vmax.f32 %v447_v46, 0.0  ;;  %v456_v56 = vmax.f32 %v448_v47, 0.0  ;;  %v457_v57 = vmax.f32 %v449_v48, 0.0  ;;  %vm540_vm5 = vcmp.lt.s32.totalorder %v532_v32, 128 }
  0x2a   : > { %v458_v59 = vmax.f32 %v450_v50, 0.0  ;;  %v459_v60 = vmax.f32 %v451_v51, 0.0  ;;  %v460_v5 = vmax.f32 %v452_v62, 0.0  ;;  %v453_v40 = vadd.f32 %v927_v26, %v438_v33 }
  0x2b   : > { %v501_v63 = vadd.f32 %v493_v27, %v455_v55  ;;  %v502_v0 = vadd.f32 %v494_v28, %v456_v56  ;;  %v503_v1 = vadd.f32 %v495_v34, %v457_v57  ;;  %v470_v27 = vld [vmem:[%s892_s27 + $0x38] sm:$0xff]  ;;  %v484_v34 = vmul.f32 %v880_v9, %v469_v19 }
  0x2c   : > { %v504_v3 = vadd.f32 %v496_v36, %v458_v59  ;;  %v505_v4 = vadd.f32 %v497_v58, %v459_v60  ;;  %v506_v23 = vadd.f32 %v498_v12, %v460_v5  ;;  %v485_v39 = vmul.f32 %v880_v9, %v470_v27 }
  0x2d   : > { %509 = vst [vmem:[%s964_s22] sm:$0xff] %v501_v63  ;;  %v543_v6 = vsel %vm535_vm0, %v501_v63, 0.0  ;;  %510 = vst [vmem:[%s964_s22 + $0x8] sm:$0xff] %v502_v0  ;;  %v544_v7 = vsel %vm536_vm1, %v502_v0, 0.0  ;;  %v545_v8 = vsel %vm537_vm2, %v503_v1, 0.0  ;;  %v499_v41 = vadd.f32 %v886_v10, %v484_v34 }
  0x2e   : > { %511 = vst [vmem:[%s964_s22 + $0x10] sm:$0xff] %v503_v1  ;;  %v559_v14 = vmul.f32 %v543_v6, %v543_v6  ;;  %v551_v15 = vadd.f32 %v544_v7, %v543_v6  ;;  %v560_v16 = vmul.f32 %v544_v7, %v544_v7  ;;  %v561_v18 = vmul.f32 %v545_v8, %v545_v8 }
  0x2f   : > { %512 = vst [vmem:[%s964_s22 + $0x18] sm:$0xff] %v504_v3  ;;  %513 = vst [vmem:[%s964_s22 + $0x20] sm:$0xff] %v505_v4  ;;  %v546_v20 = vsel %vm538_vm3, %v504_v3, 0.0  ;;  %v547_v22 = vsel %vm539_vm4, %v505_v4, 0.0  ;;  %v548_v45 = vsel %vm540_vm5, %v506_v23, 0.0  ;;  %v454_v46 = vadd.f32 %v927_v26, %v439_v38 }
  0x30   : > { %v567_v28 = vadd.f32 %v560_v16, %v559_v14  ;;  %v552_v29 = vadd.f32 %v551_v15, %v545_v8  ;;  %v562_v30 = vmul.f32 %v546_v20, %v546_v20  ;;  %v563_v31 = vmul.f32 %v547_v22, %v547_v22  ;;  %514 = vst [vmem:[%s964_s22 + $0x28] sm:$0xff] %v506_v23 }
  0x31   : > { %v564_v47 = vmul.f32 %v548_v45, %v548_v45  ;;  %v461_v21 = vmax.f32 %v453_v40, 0.0  ;;  %vm541_vm6 = vcmp.lt.s32.totalorder %v533_v42, 128  ;;  %v500_v9 = vadd.f32 %v886_v10, %v485_v39 }
  0x32   : > { %v568_v36 = vadd.f32 %v567_v28, %v561_v18  ;;  %v553_v37 = vadd.f32 %v552_v29, %v546_v20  ;;  %v462_v50 = vmax.f32 %v454_v46, 0.0  ;;  %v525_v51 = vadd.s32 56, %v888_v11 }
  0x33   : > { %v507_v52 = vadd.f32 %v499_v41, %v461_v21 }
  0x34   : > { %v569_v43 = vadd.f32 %v568_v36, %v562_v30  ;;  %v554_v44 = vadd.f32 %v553_v37, %v547_v22  ;;  %v508_v53 = vadd.f32 %v500_v9, %v462_v50  ;;  %v534_v54 = vadd.s32 %v895_v13, %v525_v51 }
  0x35   : > { %515 = vst [vmem:[%s964_s22 + $0x30] sm:$0xff] %v507_v52  ;;  %v549_v26 = vsel %vm541_vm6, %v507_v52, 0.0 }
  0x36   : > { %v570_v48 = vadd.f32 %v569_v43, %v563_v31  ;;  %v555_v49 = vadd.f32 %v554_v44, %v548_v45  ;;  %v565_v56 = vmul.f32 %v549_v26, %v549_v26  ;;  %516 = vst [vmem:[%s964_s22 + $0x38] sm:$0xff] %v508_v53  ;;  %vm542_vm7 = vcmp.lt.s32.totalorder %v534_v54, 128 }
  0x37   : > { %v550_v10 = vsel %vm542_vm7, %v508_v53, 0.0 }
  0x38   : > { %v571_v55 = vadd.f32 %v570_v48, %v564_v47  ;;  %v556_v57 = vadd.f32 %v555_v49, %v549_v26  ;;  %v566_v59 = vmul.f32 %v550_v10, %v550_v10 }
  0x3a   : > { %v557_v58 = vadd.f32 %v556_v57, %v550_v10  ;;  %v572_v11 = vadd.f32 %v571_v55, %v565_v56 }
  0x3c   : > { %558 = vst [vmem:[%s411_s25] sm:$0xff] %v557_v58  ;;  %v573_v13 = vadd.f32 %v572_v11, %v566_v59 }
  0x3e   : > { %574 = vst [vmem:[%s415_s30] sm:$0xff] %v573_v13 }
  0x3f PF: > { %p16_p10 = scmp.ge.s32.totalorder %s856_s9, 4   ;;  %s1031_s27 = smov %s786_s28 }
  0x40   : > { %s1032_s28 = smov %s865_s12  ;;  %s1033_s29 = smov %s856_s9 }
  0x41   :  { %18 = sbr.rel (!%p16_p10) target bundleno = 2 (0x2), region = 144 }

</bundles_post_ra>
